<compile_context>
chip_gen: v7x
topology: tpu7x:2x2x1
jax: 0.10.0
libtpu: 0.0.40
codegen_flags: <defaults>
</compile_context>

<pallas_src>
import functools
import math

import jax
import jax.numpy as jnp
from jax.experimental import pallas as pl
from jax.experimental.pallas import tpu as pltpu


def _splat_attn_kernel(H, HD, S,
                       xm_ref, x_ref, wqk_ref, bqk_ref, ct_ref, sp_ref,
                       wv_ref, bv_ref, wo_ref, bo_ref,
                       attn_ref, y_ref):
    D = H * HD
    b = pl.program_id(0)

    # ---- batch-independent splat attention weights: computed once (b == 0)
    # into the resident attn output block, re-read from VMEM for b > 0.
    @pl.when(b == 0)
    def _():
        xm = xm_ref[...]                                            # (T, D)
        # One lane-dense projection for q AND k of all heads: (T,D)@(D,2D).
        qkm = (jnp.dot(xm, wqk_ref[...], preferred_element_type=jnp.float32)
               + bqk_ref[...])                                      # (T, 2D)
        for h in range(H):
            qm_h = qkm[:, h * HD:(h + 1) * HD]                      # (T, HD)
            km_h = qkm[:, D + h * HD:D + (h + 1) * HD]              # (T, HD)
            ct_h = ct_ref[h]                                        # (HD, S)
            sp_h = sp_ref[h]                                        # (3, S)
            inv_var = sp_h[0:1, :]                                  # 1/(scale+1e-8)^2
            amp = sp_h[1:2, :]                                      # sigmoid(amplitude)
            c_sq = sp_h[2:3, :]                                     # |center|^2
            # |a - c|^2 = |a|^2 + |c|^2 - 2 a.c  (MXU cross term).  Clamp keeps
            # d2 >= 0; safe at this module's regime (log_scales == 0) — use the
            # direct (a - c) form if scales are ever trained very tight.
            q_sq = jnp.sum(qm_h * qm_h, axis=1, keepdims=True)      # (T, 1)
            k_sq = jnp.sum(km_h * km_h, axis=1, keepdims=True)
            d2q = jnp.maximum(
                q_sq + c_sq - 2.0 * jnp.dot(qm_h, ct_h,
                                            preferred_element_type=jnp.float32),
                0.0)
            d2k = jnp.maximum(
                k_sq + c_sq - 2.0 * jnp.dot(km_h, ct_h,
                                            preferred_element_type=jnp.float32),
                0.0)
            qg = jnp.exp(-0.5 * d2q * inv_var)                      # (T, S)
            kg = jnp.exp(-0.5 * d2k * inv_var)                      # (T, S)
            # aw[i, j] = sum_s amp_s * qg[i, s] * kg[j, s]  (T-wide lane-dense out)
            aw = jax.lax.dot_general(qg * amp, kg, (((1,), (1,)), ((), ())),
                                     preferred_element_type=jnp.float32)  # (T, T)
            # Softmax over keys.  Exact divide: these weights are a returned
            # output and their error would also flow into y.
            m = jnp.max(aw, axis=1, keepdims=True)
            e = jnp.exp(aw - m)
            attn_ref[h] = e / jnp.sum(e, axis=1, keepdims=True)

    # ---- batch-dependent path (every grid step): bf16 MXU operands, f32 acc.
    xb = x_ref[...].astype(jnp.bfloat16)                            # (T, D)
    v = (jnp.dot(xb, wv_ref[...].astype(jnp.bfloat16),
                 preferred_element_type=jnp.float32) + bv_ref[...])  # (T, D) f32
    v16 = v.astype(jnp.bfloat16)
    # Per-head attend, concatenated lane-dense in registers (drops the VMEM
    # ctx scratch and the HD-wide masked stores of the previous version).
    # TODO(synk): for production HD << 128, restructure the attend with T on
    # the lane axis (ctx^T = dot_general(v_h, attn_h)) to avoid 8/256 MXU cols.
    ctx = jnp.concatenate(
        [jnp.dot(attn_ref[h].astype(jnp.bfloat16),
                 v16[:, h * HD:(h + 1) * HD],
                 preferred_element_type=jnp.float32)
         for h in range(H)], axis=-1)                               # (T, D)
    # Single fused lane-dense output projection + bias.
    y_ref[...] = (jnp.dot(ctx.astype(jnp.bfloat16),
                          wo_ref[...].astype(jnp.bfloat16),
                          preferred_element_type=jnp.float32) + bo_ref[...])


def splat_attention_forward(x, packed):
    """x: (B, T, D) float32. Returns (y (B,T,D), attention_weights (B,T,T,H))."""
    B, T, D = x.shape
    H, HD, S = packed["centers_t"].shape
    assert D == H * HD

    xf = x.astype(jnp.float32)
    xm = jnp.mean(xf, axis=0)            # hoisted batch mean (review item 2)

    # vmem_limit sized from the actual blocks (x2 for double-buffering) + headroom.
    def nbytes(*shape):
        return 4 * math.prod(shape)
    block_bytes = (nbytes(T, D) + nbytes(T, D) + nbytes(D, 2 * D) + nbytes(1, 2 * D)
                   + nbytes(H, HD, S) + nbytes(H, 3, S)
                   + 2 * nbytes(D, D) + 2 * nbytes(1, D)
                   + nbytes(H, T, T) + nbytes(T, D))
    vmem_limit = int(min(max(4 * block_bytes, 32 * 1024 * 1024), 128 * 1024 * 1024))

    attn_htt, y = pl.pallas_call(
        functools.partial(_splat_attn_kernel, H, HD, S),
        grid=(B,),
        out_shape=(jax.ShapeDtypeStruct((H, T, T), jnp.float32),
                   jax.ShapeDtypeStruct((B, T, D), jnp.float32)),
        in_specs=[
            pl.BlockSpec((T, D), lambda b: (0, 0)),           # xm (batch mean)
            pl.BlockSpec((None, T, D), lambda b: (b, 0, 0)),  # x_b
            pl.BlockSpec((D, 2 * D), lambda b: (0, 0)),       # [Wq | Wk] lane-packed
            pl.BlockSpec((1, 2 * D), lambda b: (0, 0)),       # [bq | bk]
            pl.BlockSpec((H, HD, S), lambda b: (0, 0, 0)),    # centers^T per head
            pl.BlockSpec((H, 3, S), lambda b: (0, 0, 0)),     # [1/scale^2; sig(amp); |c|^2]
            pl.BlockSpec((D, D), lambda b: (0, 0)),           # Wv (all heads)
            pl.BlockSpec((1, D), lambda b: (0, 0)),           # bv
            pl.BlockSpec((D, D), lambda b: (0, 0)),           # W_out
            pl.BlockSpec((1, D), lambda b: (0, 0)),           # b_out
        ],
        out_specs=[
            # Resident across the whole grid (index map ignores b): written at
            # b == 0, read back in-kernel for every batch step, flushed once.
            pl.BlockSpec((H, T, T), lambda b: (0, 0, 0)),
            pl.BlockSpec((None, T, D), lambda b: (b, 0, 0)),
        ],
        compiler_params=pltpu.CompilerParams(
            # "arbitrary": the attn output block is carried across b (computed
            # at b == 0, reused afterwards), so the batch axis must run in order.
            # TODO(synk): for v7x megacore / production T, add a parallel
            # query-tile (and/or head) grid axis and tile the (H, T, T) block.
            dimension_semantics=("arbitrary",),
            vmem_limit_bytes=vmem_limit),
    )(xm, xf, packed["wqk"], packed["bqk"], packed["centers_t"],
      packed["splat_params"], packed["wv"], packed["bv"],
      packed["wo"], packed["bo"])

    # The reference's (B, T, T, H) attention is a pure batch broadcast of the
    # (H, T, T) weights; keep it a lazy wrapper-side broadcast (fuses under
    # jit).  Production callers should consume the compact (H, T, T) instead.
    attn = jnp.broadcast_to(jnp.transpose(attn_htt, (1, 2, 0))[None],
                            (B, T, T, H))
    return y, attn


def init_params(key, D, H, S):
    """Deterministic synthetic parameters mirroring the nn.Module shapes."""
    HD = D // H
    keys = jax.random.split(key, 5)
    bound = 1.0 / math.sqrt(D)
    # Linear weights stored directly in (in, out) layout.
    w_qkv = jax.random.uniform(keys[0], (D, 3 * D), jnp.float32, -bound, bound)
    b_qkv = jax.random.uniform(keys[1], (3 * D,), jnp.float32, -bound, bound)
    w_out = jax.random.uniform(keys[2], (D, D), jnp.float32, -bound, bound)
    b_out = jax.random.uniform(keys[3], (D,), jnp.float32, -bound, bound)
    centers = jax.random.normal(keys[4], (H * S, HD), jnp.float32)   # torch.randn
    log_scales = jnp.zeros((H * S,), jnp.float32)                    # torch.zeros
    amplitudes = jnp.ones((H * S,), jnp.float32)                     # torch.ones

    raw = dict(w_qkv=w_qkv, b_qkv=b_qkv, w_out=w_out, b_out=b_out,
               centers=centers, log_scales=log_scales, amplitudes=amplitudes)

    # Kernel-side packing (parameter-only glue; runs once, outside the kernel).
    scale = jnp.exp(log_scales) + 1e-8
    packed = dict(
        wqk=w_qkv[:, 0:2 * D],                                    # (D, 2D) q|k lane-packed
        bqk=b_qkv[0:2 * D].reshape(1, 2 * D),
        wv=w_qkv[:, 2 * D:3 * D],                                 # (D, D)
        bv=b_qkv[2 * D:3 * D].reshape(1, D),
        wo=w_out,                                                 # (D, D)
        bo=b_out.reshape(1, D),
        centers_t=centers.reshape(H, S, HD).transpose(0, 2, 1),   # (H, HD, S)
        splat_params=jnp.stack([                                   # (H, 3, S)
            (1.0 / (scale * scale)).reshape(H, S),                 # inverse variance
            jax.nn.sigmoid(amplitudes).reshape(H, S),              # amplitude
            jnp.sum(centers * centers, axis=-1).reshape(H, S),     # |center|^2
        ], axis=1),
    )
    return raw, packed


def reference_forward(x, raw, H, S):
    """Pure-JAX vectorized reference of the PyTorch forward (for checking)."""
    B, T, D = x.shape
    HD = D // H
    qkv = x @ raw["w_qkv"] + raw["b_qkv"]
    qkv = qkv.reshape(B, T, 3, H, HD)
    q, k, v = qkv[:, :, 0], qkv[:, :, 1], qkv[:, :, 2]
    qm = q.mean(0)                      # (T, H, HD)
    km = k.mean(0)
    centers = raw["centers"].reshape(H, S, HD)
    scale = jnp.exp(raw["log_scales"]).reshape(H, S) + 1e-8
    amp = jax.nn.sigmoid(raw["amplitudes"]).reshape(H, S)
    qd = jnp.linalg.norm(qm[:, :, None, :] - centers[None], axis=-1)   # (T, H, S)
    kd = jnp.linalg.norm(km[:, :, None, :] - centers[None], axis=-1)
    qa = jnp.exp(-0.5 * (qd / scale[None]) ** 2)
    ka = jnp.exp(-0.5 * (kd / scale[None]) ** 2)
    aw = jnp.einsum('ihs,jhs,hs->ijh', qa, ka, amp)                    # (T, T, H)
    aw = jnp.broadcast_to(aw[None], (B, T, T, H))
    aw = jax.nn.softmax(aw, axis=2)
    out = jnp.einsum('btsh,bshd->bthd', aw, v).reshape(B, T, D)
    y = out @ raw["w_out"] + raw["b_out"]
    return y, aw


if __name__ == "__main__":
    B, T, D = 2, 8, 32
    H, S = 4, 12        # n_heads=4, n_splats=12 (module defaults); head_dim=8

    key = jax.random.PRNGKey(0)
    kx, kp = jax.random.split(key)
    x = jax.random.normal(kx, (B, T, D), jnp.float32)
    raw, packed = init_params(kp, D, H, S)

    y, attn = splat_attention_forward(x, packed)
    jax.block_until_ready((y, attn))

    y_ref, attn_ref = reference_forward(x, raw, H, S)
    assert y.shape == (B, T, D) and attn.shape == (B, T, T, H)
    # Weight path stays f32 (computed once) -> attention matches the f32
    # reference tightly.
    assert jnp.allclose(attn, attn_ref, atol=1e-3, rtol=1e-3), "attention mismatch"
    # Batch path uses bf16 MXU operands (f32 accumulation) per the perf review;
    # validate y against the f32 reference at a bf16-appropriate tolerance.
    assert jnp.allclose(y, y_ref, atol=5e-3, rtol=5e-3), "output mismatch"

    print("KERNEL_OK")
</pallas_src>

<mosaic_0001>
module attributes {stable_mosaic.version = 11 : i64} {
  func.func @_splat_attn_kernel(%arg0: i32, %arg1: memref<8x32xf32, #tpu.memory_space<vmem>>, %arg2: memref<1x8x32xf32, #tpu.memory_space<vmem>>, %arg3: memref<32x64xf32, #tpu.memory_space<vmem>>, %arg4: memref<1x64xf32, #tpu.memory_space<vmem>>, %arg5: memref<4x8x12xf32, #tpu.memory_space<vmem>>, %arg6: memref<4x3x12xf32, #tpu.memory_space<vmem>>, %arg7: memref<32x32xf32, #tpu.memory_space<vmem>>, %arg8: memref<1x32xf32, #tpu.memory_space<vmem>>, %arg9: memref<32x32xf32, #tpu.memory_space<vmem>>, %arg10: memref<1x32xf32, #tpu.memory_space<vmem>>, %arg11: memref<4x8x8xf32, #tpu.memory_space<vmem>>, %arg12: memref<1x8x32xf32, #tpu.memory_space<vmem>>) attributes {dimension_semantics = [#tpu.dimension_semantics<arbitrary>], iteration_bounds = array<i64: 2>, scalar_prefetch = 0 : i64, scratch_operands = 0 : i64, tpu.core_type = #tpu.core_type<tc>, window_params = [{pipeline_mode = #tpu.pipeline_mode<synchronous>, transform_indices = @transform_0, window_bounds = array<i64: 8, 32>}, {transform_indices = @transform_1, window_bounds = array<i64: 1, 8, 32>}, {pipeline_mode = #tpu.pipeline_mode<synchronous>, transform_indices = @transform_2, window_bounds = array<i64: 32, 64>}, {pipeline_mode = #tpu.pipeline_mode<synchronous>, transform_indices = @transform_3, window_bounds = array<i64: 1, 64>}, {pipeline_mode = #tpu.pipeline_mode<synchronous>, transform_indices = @transform_4, window_bounds = array<i64: 4, 8, 12>}, {pipeline_mode = #tpu.pipeline_mode<synchronous>, transform_indices = @transform_5, window_bounds = array<i64: 4, 3, 12>}, {pipeline_mode = #tpu.pipeline_mode<synchronous>, transform_indices = @transform_6, window_bounds = array<i64: 32, 32>}, {pipeline_mode = #tpu.pipeline_mode<synchronous>, transform_indices = @transform_7, window_bounds = array<i64: 1, 32>}, {pipeline_mode = #tpu.pipeline_mode<synchronous>, transform_indices = @transform_8, window_bounds = array<i64: 32, 32>}, {pipeline_mode = #tpu.pipeline_mode<synchronous>, transform_indices = @transform_9, window_bounds = array<i64: 1, 32>}, {pipeline_mode = #tpu.pipeline_mode<synchronous>, transform_indices = @transform_10, window_bounds = array<i64: 4, 8, 8>}, {transform_indices = @transform_11, window_bounds = array<i64: 1, 8, 32>}]} {
    %c0_i32 = arith.constant 0 : i32
    %0 = arith.cmpi eq, %arg0, %c0_i32 : i32
    %1 = arith.extui %0 : i1 to i32
    %c0_i32_0 = arith.constant 0 : i32
    %2 = arith.cmpi ne, %1, %c0_i32_0 : i32
    scf.if %2 {
      %c0_28 = arith.constant 0 : index
      %c0_29 = arith.constant 0 : index
      %44 = vector.load %arg1[%c0_28, %c0_29] : memref<8x32xf32, #tpu.memory_space<vmem>>, vector<8x32xf32>
      %c0_30 = arith.constant 0 : index
      %c0_31 = arith.constant 0 : index
      %45 = vector.load %arg3[%c0_30, %c0_31] : memref<32x64xf32, #tpu.memory_space<vmem>>, vector<32x64xf32>
      %cst_32 = arith.constant dense<0.000000e+00> : vector<8x64xf32>
      %46 = tpu.matmul %44, %45, %cst_32 {dimension_numbers = #tpu.dot_dimension_numbers<[1], [0], [0], [1], [0, 0, 1, 1], [], []>} : vector<8x32xf32>, vector<32x64xf32>, vector<8x64xf32> -> vector<8x64xf32>
      %c0_33 = arith.constant 0 : index
      %c0_34 = arith.constant 0 : index
      %47 = vector.load %arg4[%c0_33, %c0_34] : memref<1x64xf32, #tpu.memory_space<vmem>>, vector<1x64xf32>
      %48 = vector.broadcast %47 : vector<1x64xf32> to vector<8x64xf32>
      %49 = arith.addf %46, %48 : vector<8x64xf32>
      %50 = vector.extract_strided_slice %49 {offsets = [0, 0], sizes = [8, 8], strides = [1, 1]} : vector<8x64xf32> to vector<8x8xf32>
      %51 = vector.extract_strided_slice %49 {offsets = [0, 32], sizes = [8, 8], strides = [1, 1]} : vector<8x64xf32> to vector<8x8xf32>
      %c0_35 = arith.constant 0 : index
      %c0_36 = arith.constant 0 : index
      %c0_37 = arith.constant 0 : index
      %52 = vector.load %arg5[%c0_35, %c0_36, %c0_37] : memref<4x8x12xf32, #tpu.memory_space<vmem>>, vector<1x8x12xf32>
      %53 = vector.shape_cast %52 : vector<1x8x12xf32> to vector<8x12xf32>
      %c0_38 = arith.constant 0 : index
      %c0_39 = arith.constant 0 : index
      %c0_40 = arith.constant 0 : index
      %54 = vector.load %arg6[%c0_38, %c0_39, %c0_40] : memref<4x3x12xf32, #tpu.memory_space<vmem>>, vector<1x3x12xf32>
      %55 = vector.shape_cast %54 : vector<1x3x12xf32> to vector<3x12xf32>
      %56 = vector.extract_strided_slice %55 {offsets = [0, 0], sizes = [1, 12], strides = [1, 1]} : vector<3x12xf32> to vector<1x12xf32>
      %57 = vector.extract_strided_slice %55 {offsets = [1, 0], sizes = [1, 12], strides = [1, 1]} : vector<3x12xf32> to vector<1x12xf32>
      %58 = vector.extract_strided_slice %55 {offsets = [2, 0], sizes = [1, 12], strides = [1, 1]} : vector<3x12xf32> to vector<1x12xf32>
      %59 = arith.mulf %50, %50 : vector<8x8xf32>
      %cst_41 = arith.constant dense<0.000000e+00> : vector<8xf32>
      %60 = vector.multi_reduction <add>, %59, %cst_41 [1] : vector<8x8xf32> to vector<8xf32>
      %61 = vector.shape_cast %60 : vector<8xf32> to vector<8x1xf32>
      %62 = arith.mulf %51, %51 : vector<8x8xf32>
      %cst_42 = arith.constant dense<0.000000e+00> : vector<8xf32>
      %63 = vector.multi_reduction <add>, %62, %cst_42 [1] : vector<8x8xf32> to vector<8xf32>
      %64 = vector.shape_cast %63 : vector<8xf32> to vector<8x1xf32>
      %65 = vector.broadcast %61 : vector<8x1xf32> to vector<8x12xf32>
      %66 = vector.broadcast %58 : vector<1x12xf32> to vector<8x12xf32>
      %67 = arith.addf %65, %66 : vector<8x12xf32>
      %cst_43 = arith.constant dense<0.000000e+00> : vector<8x12xf32>
      %68 = tpu.matmul %50, %53, %cst_43 {dimension_numbers = #tpu.dot_dimension_numbers<[1], [0], [0], [1], [0, 0, 1, 1], [], []>} : vector<8x8xf32>, vector<8x12xf32>, vector<8x12xf32> -> vector<8x12xf32>
      %cst_44 = arith.constant 2.000000e+00 : f32
      %69 = vector.broadcast %cst_44 : f32 to vector<8x12xf32>
      %70 = arith.mulf %69, %68 : vector<8x12xf32>
      %71 = arith.subf %67, %70 : vector<8x12xf32>
      %cst_45 = arith.constant 0.000000e+00 : f32
      %72 = vector.broadcast %cst_45 : f32 to vector<8x12xf32>
      %73 = arith.maximumf %71, %72 : vector<8x12xf32>
      %74 = vector.broadcast %64 : vector<8x1xf32> to vector<8x12xf32>
      %75 = vector.broadcast %58 : vector<1x12xf32> to vector<8x12xf32>
      %76 = arith.addf %74, %75 : vector<8x12xf32>
      %cst_46 = arith.constant dense<0.000000e+00> : vector<8x12xf32>
      %77 = tpu.matmul %51, %53, %cst_46 {dimension_numbers = #tpu.dot_dimension_numbers<[1], [0], [0], [1], [0, 0, 1, 1], [], []>} : vector<8x8xf32>, vector<8x12xf32>, vector<8x12xf32> -> vector<8x12xf32>
      %cst_47 = arith.constant 2.000000e+00 : f32
      %78 = vector.broadcast %cst_47 : f32 to vector<8x12xf32>
      %79 = arith.mulf %78, %77 : vector<8x12xf32>
      %80 = arith.subf %76, %79 : vector<8x12xf32>
      %cst_48 = arith.constant 0.000000e+00 : f32
      %81 = vector.broadcast %cst_48 : f32 to vector<8x12xf32>
      %82 = arith.maximumf %80, %81 : vector<8x12xf32>
      %cst_49 = arith.constant -5.000000e-01 : f32
      %83 = vector.broadcast %cst_49 : f32 to vector<8x12xf32>
      %84 = arith.mulf %83, %73 : vector<8x12xf32>
      %85 = vector.broadcast %56 : vector<1x12xf32> to vector<8x12xf32>
      %86 = arith.mulf %84, %85 : vector<8x12xf32>
      %87 = math.exp %86 : vector<8x12xf32>
      %cst_50 = arith.constant -5.000000e-01 : f32
      %88 = vector.broadcast %cst_50 : f32 to vector<8x12xf32>
      %89 = arith.mulf %88, %82 : vector<8x12xf32>
      %90 = vector.broadcast %56 : vector<1x12xf32> to vector<8x12xf32>
      %91 = arith.mulf %89, %90 : vector<8x12xf32>
      %92 = math.exp %91 : vector<8x12xf32>
      %93 = vector.broadcast %57 : vector<1x12xf32> to vector<8x12xf32>
      %94 = arith.mulf %87, %93 : vector<8x12xf32>
      %cst_51 = arith.constant dense<0.000000e+00> : vector<8x8xf32>
      %95 = tpu.matmul %94, %92, %cst_51 {dimension_numbers = #tpu.dot_dimension_numbers<[1], [1], [0], [0], [0, 0, 1, 0], [], []>} : vector<8x12xf32>, vector<8x12xf32>, vector<8x8xf32> -> vector<8x8xf32>
      %cst_52 = arith.constant dense<0xFF800000> : vector<8xf32>
      %96 = vector.multi_reduction <maximumf>, %95, %cst_52 [1] : vector<8x8xf32> to vector<8xf32>
      %97 = vector.shape_cast %96 : vector<8xf32> to vector<8x1xf32>
      %98 = vector.broadcast %97 : vector<8x1xf32> to vector<8x8xf32>
      %99 = arith.subf %95, %98 : vector<8x8xf32>
      %100 = math.exp %99 : vector<8x8xf32>
      %cst_53 = arith.constant dense<0.000000e+00> : vector<8xf32>
      %101 = vector.multi_reduction <add>, %100, %cst_53 [1] : vector<8x8xf32> to vector<8xf32>
      %102 = vector.shape_cast %101 : vector<8xf32> to vector<8x1xf32>
      %103 = vector.broadcast %102 : vector<8x1xf32> to vector<8x8xf32>
      %104 = arith.divf %100, %103 : vector<8x8xf32>
      %c0_54 = arith.constant 0 : index
      %c0_55 = arith.constant 0 : index
      %c0_56 = arith.constant 0 : index
      %105 = vector.load %arg11[%c0_54, %c0_55, %c0_56] : memref<4x8x8xf32, #tpu.memory_space<vmem>>, vector<1x8x8xf32>
      %106 = vector.shape_cast %105 : vector<1x8x8xf32> to vector<8x8xf32>
      %107 = vector.shape_cast %104 : vector<8x8xf32> to vector<1x8x8xf32>
      tpu.vector_store %arg11[%c0_54, %c0_55, %c0_56], %107 {strides = array<i32>} : memref<4x8x8xf32, #tpu.memory_space<vmem>>, vector<1x8x8xf32>,
      %108 = vector.extract_strided_slice %49 {offsets = [0, 8], sizes = [8, 8], strides = [1, 1]} : vector<8x64xf32> to vector<8x8xf32>
      %109 = vector.extract_strided_slice %49 {offsets = [0, 40], sizes = [8, 8], strides = [1, 1]} : vector<8x64xf32> to vector<8x8xf32>
      %c1_57 = arith.constant 1 : index
      %c0_58 = arith.constant 0 : index
      %c0_59 = arith.constant 0 : index
      %110 = vector.load %arg5[%c1_57, %c0_58, %c0_59] : memref<4x8x12xf32, #tpu.memory_space<vmem>>, vector<1x8x12xf32>
      %111 = vector.shape_cast %110 : vector<1x8x12xf32> to vector<8x12xf32>
      %c1_60 = arith.constant 1 : index
      %c0_61 = arith.constant 0 : index
      %c0_62 = arith.constant 0 : index
      %112 = vector.load %arg6[%c1_60, %c0_61, %c0_62] : memref<4x3x12xf32, #tpu.memory_space<vmem>>, vector<1x3x12xf32>
      %113 = vector.shape_cast %112 : vector<1x3x12xf32> to vector<3x12xf32>
      %114 = vector.extract_strided_slice %113 {offsets = [0, 0], sizes = [1, 12], strides = [1, 1]} : vector<3x12xf32> to vector<1x12xf32>
      %115 = vector.extract_strided_slice %113 {offsets = [1, 0], sizes = [1, 12], strides = [1, 1]} : vector<3x12xf32> to vector<1x12xf32>
      %116 = vector.extract_strided_slice %113 {offsets = [2, 0], sizes = [1, 12], strides = [1, 1]} : vector<3x12xf32> to vector<1x12xf32>
      %117 = arith.mulf %108, %108 : vector<8x8xf32>
      %cst_63 = arith.constant dense<0.000000e+00> : vector<8xf32>
      %118 = vector.multi_reduction <add>, %117, %cst_63 [1] : vector<8x8xf32> to vector<8xf32>
      %119 = vector.shape_cast %118 : vector<8xf32> to vector<8x1xf32>
      %120 = arith.mulf %109, %109 : vector<8x8xf32>
      %cst_64 = arith.constant dense<0.000000e+00> : vector<8xf32>
      %121 = vector.multi_reduction <add>, %120, %cst_64 [1] : vector<8x8xf32> to vector<8xf32>
      %122 = vector.shape_cast %121 : vector<8xf32> to vector<8x1xf32>
      %123 = vector.broadcast %119 : vector<8x1xf32> to vector<8x12xf32>
      %124 = vector.broadcast %116 : vector<1x12xf32> to vector<8x12xf32>
      %125 = arith.addf %123, %124 : vector<8x12xf32>
      %cst_65 = arith.constant dense<0.000000e+00> : vector<8x12xf32>
      %126 = tpu.matmul %108, %111, %cst_65 {dimension_numbers = #tpu.dot_dimension_numbers<[1], [0], [0], [1], [0, 0, 1, 1], [], []>} : vector<8x8xf32>, vector<8x12xf32>, vector<8x12xf32> -> vector<8x12xf32>
      %cst_66 = arith.constant 2.000000e+00 : f32
      %127 = vector.broadcast %cst_66 : f32 to vector<8x12xf32>
      %128 = arith.mulf %127, %126 : vector<8x12xf32>
      %129 = arith.subf %125, %128 : vector<8x12xf32>
      %cst_67 = arith.constant 0.000000e+00 : f32
      %130 = vector.broadcast %cst_67 : f32 to vector<8x12xf32>
      %131 = arith.maximumf %129, %130 : vector<8x12xf32>
      %132 = vector.broadcast %122 : vector<8x1xf32> to vector<8x12xf32>
      %133 = vector.broadcast %116 : vector<1x12xf32> to vector<8x12xf32>
      %134 = arith.addf %132, %133 : vector<8x12xf32>
      %cst_68 = arith.constant dense<0.000000e+00> : vector<8x12xf32>
      %135 = tpu.matmul %109, %111, %cst_68 {dimension_numbers = #tpu.dot_dimension_numbers<[1], [0], [0], [1], [0, 0, 1, 1], [], []>} : vector<8x8xf32>, vector<8x12xf32>, vector<8x12xf32> -> vector<8x12xf32>
      %cst_69 = arith.constant 2.000000e+00 : f32
      %136 = vector.broadcast %cst_69 : f32 to vector<8x12xf32>
      %137 = arith.mulf %136, %135 : vector<8x12xf32>
      %138 = arith.subf %134, %137 : vector<8x12xf32>
      %cst_70 = arith.constant 0.000000e+00 : f32
      %139 = vector.broadcast %cst_70 : f32 to vector<8x12xf32>
      %140 = arith.maximumf %138, %139 : vector<8x12xf32>
      %cst_71 = arith.constant -5.000000e-01 : f32
      %141 = vector.broadcast %cst_71 : f32 to vector<8x12xf32>
      %142 = arith.mulf %141, %131 : vector<8x12xf32>
      %143 = vector.broadcast %114 : vector<1x12xf32> to vector<8x12xf32>
      %144 = arith.mulf %142, %143 : vector<8x12xf32>
      %145 = math.exp %144 : vector<8x12xf32>
      %cst_72 = arith.constant -5.000000e-01 : f32
      %146 = vector.broadcast %cst_72 : f32 to vector<8x12xf32>
      %147 = arith.mulf %146, %140 : vector<8x12xf32>
      %148 = vector.broadcast %114 : vector<1x12xf32> to vector<8x12xf32>
      %149 = arith.mulf %147, %148 : vector<8x12xf32>
      %150 = math.exp %149 : vector<8x12xf32>
      %151 = vector.broadcast %115 : vector<1x12xf32> to vector<8x12xf32>
      %152 = arith.mulf %145, %151 : vector<8x12xf32>
      %cst_73 = arith.constant dense<0.000000e+00> : vector<8x8xf32>
      %153 = tpu.matmul %152, %150, %cst_73 {dimension_numbers = #tpu.dot_dimension_numbers<[1], [1], [0], [0], [0, 0, 1, 0], [], []>} : vector<8x12xf32>, vector<8x12xf32>, vector<8x8xf32> -> vector<8x8xf32>
      %cst_74 = arith.constant dense<0xFF800000> : vector<8xf32>
      %154 = vector.multi_reduction <maximumf>, %153, %cst_74 [1] : vector<8x8xf32> to vector<8xf32>
      %155 = vector.shape_cast %154 : vector<8xf32> to vector<8x1xf32>
      %156 = vector.broadcast %155 : vector<8x1xf32> to vector<8x8xf32>
      %157 = arith.subf %153, %156 : vector<8x8xf32>
      %158 = math.exp %157 : vector<8x8xf32>
      %cst_75 = arith.constant dense<0.000000e+00> : vector<8xf32>
      %159 = vector.multi_reduction <add>, %158, %cst_75 [1] : vector<8x8xf32> to vector<8xf32>
      %160 = vector.shape_cast %159 : vector<8xf32> to vector<8x1xf32>
      %161 = vector.broadcast %160 : vector<8x1xf32> to vector<8x8xf32>
      %162 = arith.divf %158, %161 : vector<8x8xf32>
      %c1_76 = arith.constant 1 : index
      %c0_77 = arith.constant 0 : index
      %c0_78 = arith.constant 0 : index
      %163 = vector.load %arg11[%c1_76, %c0_77, %c0_78] : memref<4x8x8xf32, #tpu.memory_space<vmem>>, vector<1x8x8xf32>
      %164 = vector.shape_cast %163 : vector<1x8x8xf32> to vector<8x8xf32>
      %165 = vector.shape_cast %162 : vector<8x8xf32> to vector<1x8x8xf32>
      tpu.vector_store %arg11[%c1_76, %c0_77, %c0_78], %165 {strides = array<i32>} : memref<4x8x8xf32, #tpu.memory_space<vmem>>, vector<1x8x8xf32>,
      %166 = vector.extract_strided_slice %49 {offsets = [0, 16], sizes = [8, 8], strides = [1, 1]} : vector<8x64xf32> to vector<8x8xf32>
      %167 = vector.extract_strided_slice %49 {offsets = [0, 48], sizes = [8, 8], strides = [1, 1]} : vector<8x64xf32> to vector<8x8xf32>
      %c2_79 = arith.constant 2 : index
      %c0_80 = arith.constant 0 : index
      %c0_81 = arith.constant 0 : index
      %168 = vector.load %arg5[%c2_79, %c0_80, %c0_81] : memref<4x8x12xf32, #tpu.memory_space<vmem>>, vector<1x8x12xf32>
      %169 = vector.shape_cast %168 : vector<1x8x12xf32> to vector<8x12xf32>
      %c2_82 = arith.constant 2 : index
      %c0_83 = arith.constant 0 : index
      %c0_84 = arith.constant 0 : index
      %170 = vector.load %arg6[%c2_82, %c0_83, %c0_84] : memref<4x3x12xf32, #tpu.memory_space<vmem>>, vector<1x3x12xf32>
      %171 = vector.shape_cast %170 : vector<1x3x12xf32> to vector<3x12xf32>
      %172 = vector.extract_strided_slice %171 {offsets = [0, 0], sizes = [1, 12], strides = [1, 1]} : vector<3x12xf32> to vector<1x12xf32>
      %173 = vector.extract_strided_slice %171 {offsets = [1, 0], sizes = [1, 12], strides = [1, 1]} : vector<3x12xf32> to vector<1x12xf32>
      %174 = vector.extract_strided_slice %171 {offsets = [2, 0], sizes = [1, 12], strides = [1, 1]} : vector<3x12xf32> to vector<1x12xf32>
      %175 = arith.mulf %166, %166 : vector<8x8xf32>
      %cst_85 = arith.constant dense<0.000000e+00> : vector<8xf32>
      %176 = vector.multi_reduction <add>, %175, %cst_85 [1] : vector<8x8xf32> to vector<8xf32>
      %177 = vector.shape_cast %176 : vector<8xf32> to vector<8x1xf32>
      %178 = arith.mulf %167, %167 : vector<8x8xf32>
      %cst_86 = arith.constant dense<0.000000e+00> : vector<8xf32>
      %179 = vector.multi_reduction <add>, %178, %cst_86 [1] : vector<8x8xf32> to vector<8xf32>
      %180 = vector.shape_cast %179 : vector<8xf32> to vector<8x1xf32>
      %181 = vector.broadcast %177 : vector<8x1xf32> to vector<8x12xf32>
      %182 = vector.broadcast %174 : vector<1x12xf32> to vector<8x12xf32>
      %183 = arith.addf %181, %182 : vector<8x12xf32>
      %cst_87 = arith.constant dense<0.000000e+00> : vector<8x12xf32>
      %184 = tpu.matmul %166, %169, %cst_87 {dimension_numbers = #tpu.dot_dimension_numbers<[1], [0], [0], [1], [0, 0, 1, 1], [], []>} : vector<8x8xf32>, vector<8x12xf32>, vector<8x12xf32> -> vector<8x12xf32>
      %cst_88 = arith.constant 2.000000e+00 : f32
      %185 = vector.broadcast %cst_88 : f32 to vector<8x12xf32>
      %186 = arith.mulf %185, %184 : vector<8x12xf32>
      %187 = arith.subf %183, %186 : vector<8x12xf32>
      %cst_89 = arith.constant 0.000000e+00 : f32
      %188 = vector.broadcast %cst_89 : f32 to vector<8x12xf32>
      %189 = arith.maximumf %187, %188 : vector<8x12xf32>
      %190 = vector.broadcast %180 : vector<8x1xf32> to vector<8x12xf32>
      %191 = vector.broadcast %174 : vector<1x12xf32> to vector<8x12xf32>
      %192 = arith.addf %190, %191 : vector<8x12xf32>
      %cst_90 = arith.constant dense<0.000000e+00> : vector<8x12xf32>
      %193 = tpu.matmul %167, %169, %cst_90 {dimension_numbers = #tpu.dot_dimension_numbers<[1], [0], [0], [1], [0, 0, 1, 1], [], []>} : vector<8x8xf32>, vector<8x12xf32>, vector<8x12xf32> -> vector<8x12xf32>
      %cst_91 = arith.constant 2.000000e+00 : f32
      %194 = vector.broadcast %cst_91 : f32 to vector<8x12xf32>
      %195 = arith.mulf %194, %193 : vector<8x12xf32>
      %196 = arith.subf %192, %195 : vector<8x12xf32>
      %cst_92 = arith.constant 0.000000e+00 : f32
      %197 = vector.broadcast %cst_92 : f32 to vector<8x12xf32>
      %198 = arith.maximumf %196, %197 : vector<8x12xf32>
      %cst_93 = arith.constant -5.000000e-01 : f32
      %199 = vector.broadcast %cst_93 : f32 to vector<8x12xf32>
      %200 = arith.mulf %199, %189 : vector<8x12xf32>
      %201 = vector.broadcast %172 : vector<1x12xf32> to vector<8x12xf32>
      %202 = arith.mulf %200, %201 : vector<8x12xf32>
      %203 = math.exp %202 : vector<8x12xf32>
      %cst_94 = arith.constant -5.000000e-01 : f32
      %204 = vector.broadcast %cst_94 : f32 to vector<8x12xf32>
      %205 = arith.mulf %204, %198 : vector<8x12xf32>
      %206 = vector.broadcast %172 : vector<1x12xf32> to vector<8x12xf32>
      %207 = arith.mulf %205, %206 : vector<8x12xf32>
      %208 = math.exp %207 : vector<8x12xf32>
      %209 = vector.broadcast %173 : vector<1x12xf32> to vector<8x12xf32>
      %210 = arith.mulf %203, %209 : vector<8x12xf32>
      %cst_95 = arith.constant dense<0.000000e+00> : vector<8x8xf32>
      %211 = tpu.matmul %210, %208, %cst_95 {dimension_numbers = #tpu.dot_dimension_numbers<[1], [1], [0], [0], [0, 0, 1, 0], [], []>} : vector<8x12xf32>, vector<8x12xf32>, vector<8x8xf32> -> vector<8x8xf32>
      %cst_96 = arith.constant dense<0xFF800000> : vector<8xf32>
      %212 = vector.multi_reduction <maximumf>, %211, %cst_96 [1] : vector<8x8xf32> to vector<8xf32>
      %213 = vector.shape_cast %212 : vector<8xf32> to vector<8x1xf32>
      %214 = vector.broadcast %213 : vector<8x1xf32> to vector<8x8xf32>
      %215 = arith.subf %211, %214 : vector<8x8xf32>
      %216 = math.exp %215 : vector<8x8xf32>
      %cst_97 = arith.constant dense<0.000000e+00> : vector<8xf32>
      %217 = vector.multi_reduction <add>, %216, %cst_97 [1] : vector<8x8xf32> to vector<8xf32>
      %218 = vector.shape_cast %217 : vector<8xf32> to vector<8x1xf32>
      %219 = vector.broadcast %218 : vector<8x1xf32> to vector<8x8xf32>
      %220 = arith.divf %216, %219 : vector<8x8xf32>
      %c2_98 = arith.constant 2 : index
      %c0_99 = arith.constant 0 : index
      %c0_100 = arith.constant 0 : index
      %221 = vector.load %arg11[%c2_98, %c0_99, %c0_100] : memref<4x8x8xf32, #tpu.memory_space<vmem>>, vector<1x8x8xf32>
      %222 = vector.shape_cast %221 : vector<1x8x8xf32> to vector<8x8xf32>
      %223 = vector.shape_cast %220 : vector<8x8xf32> to vector<1x8x8xf32>
      tpu.vector_store %arg11[%c2_98, %c0_99, %c0_100], %223 {strides = array<i32>} : memref<4x8x8xf32, #tpu.memory_space<vmem>>, vector<1x8x8xf32>,
      %224 = vector.extract_strided_slice %49 {offsets = [0, 24], sizes = [8, 8], strides = [1, 1]} : vector<8x64xf32> to vector<8x8xf32>
      %225 = vector.extract_strided_slice %49 {offsets = [0, 56], sizes = [8, 8], strides = [1, 1]} : vector<8x64xf32> to vector<8x8xf32>
      %c3_101 = arith.constant 3 : index
      %c0_102 = arith.constant 0 : index
      %c0_103 = arith.constant 0 : index
      %226 = vector.load %arg5[%c3_101, %c0_102, %c0_103] : memref<4x8x12xf32, #tpu.memory_space<vmem>>, vector<1x8x12xf32>
      %227 = vector.shape_cast %226 : vector<1x8x12xf32> to vector<8x12xf32>
      %c3_104 = arith.constant 3 : index
      %c0_105 = arith.constant 0 : index
      %c0_106 = arith.constant 0 : index
      %228 = vector.load %arg6[%c3_104, %c0_105, %c0_106] : memref<4x3x12xf32, #tpu.memory_space<vmem>>, vector<1x3x12xf32>
      %229 = vector.shape_cast %228 : vector<1x3x12xf32> to vector<3x12xf32>
      %230 = vector.extract_strided_slice %229 {offsets = [0, 0], sizes = [1, 12], strides = [1, 1]} : vector<3x12xf32> to vector<1x12xf32>
      %231 = vector.extract_strided_slice %229 {offsets = [1, 0], sizes = [1, 12], strides = [1, 1]} : vector<3x12xf32> to vector<1x12xf32>
      %232 = vector.extract_strided_slice %229 {offsets = [2, 0], sizes = [1, 12], strides = [1, 1]} : vector<3x12xf32> to vector<1x12xf32>
      %233 = arith.mulf %224, %224 : vector<8x8xf32>
      %cst_107 = arith.constant dense<0.000000e+00> : vector<8xf32>
      %234 = vector.multi_reduction <add>, %233, %cst_107 [1] : vector<8x8xf32> to vector<8xf32>
      %235 = vector.shape_cast %234 : vector<8xf32> to vector<8x1xf32>
      %236 = arith.mulf %225, %225 : vector<8x8xf32>
      %cst_108 = arith.constant dense<0.000000e+00> : vector<8xf32>
      %237 = vector.multi_reduction <add>, %236, %cst_108 [1] : vector<8x8xf32> to vector<8xf32>
      %238 = vector.shape_cast %237 : vector<8xf32> to vector<8x1xf32>
      %239 = vector.broadcast %235 : vector<8x1xf32> to vector<8x12xf32>
      %240 = vector.broadcast %232 : vector<1x12xf32> to vector<8x12xf32>
      %241 = arith.addf %239, %240 : vector<8x12xf32>
      %cst_109 = arith.constant dense<0.000000e+00> : vector<8x12xf32>
      %242 = tpu.matmul %224, %227, %cst_109 {dimension_numbers = #tpu.dot_dimension_numbers<[1], [0], [0], [1], [0, 0, 1, 1], [], []>} : vector<8x8xf32>, vector<8x12xf32>, vector<8x12xf32> -> vector<8x12xf32>
      %cst_110 = arith.constant 2.000000e+00 : f32
      %243 = vector.broadcast %cst_110 : f32 to vector<8x12xf32>
      %244 = arith.mulf %243, %242 : vector<8x12xf32>
      %245 = arith.subf %241, %244 : vector<8x12xf32>
      %cst_111 = arith.constant 0.000000e+00 : f32
      %246 = vector.broadcast %cst_111 : f32 to vector<8x12xf32>
      %247 = arith.maximumf %245, %246 : vector<8x12xf32>
      %248 = vector.broadcast %238 : vector<8x1xf32> to vector<8x12xf32>
      %249 = vector.broadcast %232 : vector<1x12xf32> to vector<8x12xf32>
      %250 = arith.addf %248, %249 : vector<8x12xf32>
      %cst_112 = arith.constant dense<0.000000e+00> : vector<8x12xf32>
      %251 = tpu.matmul %225, %227, %cst_112 {dimension_numbers = #tpu.dot_dimension_numbers<[1], [0], [0], [1], [0, 0, 1, 1], [], []>} : vector<8x8xf32>, vector<8x12xf32>, vector<8x12xf32> -> vector<8x12xf32>
      %cst_113 = arith.constant 2.000000e+00 : f32
      %252 = vector.broadcast %cst_113 : f32 to vector<8x12xf32>
      %253 = arith.mulf %252, %251 : vector<8x12xf32>
      %254 = arith.subf %250, %253 : vector<8x12xf32>
      %cst_114 = arith.constant 0.000000e+00 : f32
      %255 = vector.broadcast %cst_114 : f32 to vector<8x12xf32>
      %256 = arith.maximumf %254, %255 : vector<8x12xf32>
      %cst_115 = arith.constant -5.000000e-01 : f32
      %257 = vector.broadcast %cst_115 : f32 to vector<8x12xf32>
      %258 = arith.mulf %257, %247 : vector<8x12xf32>
      %259 = vector.broadcast %230 : vector<1x12xf32> to vector<8x12xf32>
      %260 = arith.mulf %258, %259 : vector<8x12xf32>
      %261 = math.exp %260 : vector<8x12xf32>
      %cst_116 = arith.constant -5.000000e-01 : f32
      %262 = vector.broadcast %cst_116 : f32 to vector<8x12xf32>
      %263 = arith.mulf %262, %256 : vector<8x12xf32>
      %264 = vector.broadcast %230 : vector<1x12xf32> to vector<8x12xf32>
      %265 = arith.mulf %263, %264 : vector<8x12xf32>
      %266 = math.exp %265 : vector<8x12xf32>
      %267 = vector.broadcast %231 : vector<1x12xf32> to vector<8x12xf32>
      %268 = arith.mulf %261, %267 : vector<8x12xf32>
      %cst_117 = arith.constant dense<0.000000e+00> : vector<8x8xf32>
      %269 = tpu.matmul %268, %266, %cst_117 {dimension_numbers = #tpu.dot_dimension_numbers<[1], [1], [0], [0], [0, 0, 1, 0], [], []>} : vector<8x12xf32>, vector<8x12xf32>, vector<8x8xf32> -> vector<8x8xf32>
      %cst_118 = arith.constant dense<0xFF800000> : vector<8xf32>
      %270 = vector.multi_reduction <maximumf>, %269, %cst_118 [1] : vector<8x8xf32> to vector<8xf32>
      %271 = vector.shape_cast %270 : vector<8xf32> to vector<8x1xf32>
      %272 = vector.broadcast %271 : vector<8x1xf32> to vector<8x8xf32>
      %273 = arith.subf %269, %272 : vector<8x8xf32>
      %274 = math.exp %273 : vector<8x8xf32>
      %cst_119 = arith.constant dense<0.000000e+00> : vector<8xf32>
      %275 = vector.multi_reduction <add>, %274, %cst_119 [1] : vector<8x8xf32> to vector<8xf32>
      %276 = vector.shape_cast %275 : vector<8xf32> to vector<8x1xf32>
      %277 = vector.broadcast %276 : vector<8x1xf32> to vector<8x8xf32>
      %278 = arith.divf %274, %277 : vector<8x8xf32>
      %c3_120 = arith.constant 3 : index
      %c0_121 = arith.constant 0 : index
      %c0_122 = arith.constant 0 : index
      %279 = vector.load %arg11[%c3_120, %c0_121, %c0_122] : memref<4x8x8xf32, #tpu.memory_space<vmem>>, vector<1x8x8xf32>
      %280 = vector.shape_cast %279 : vector<1x8x8xf32> to vector<8x8xf32>
      %281 = vector.shape_cast %278 : vector<8x8xf32> to vector<1x8x8xf32>
      tpu.vector_store %arg11[%c3_120, %c0_121, %c0_122], %281 {strides = array<i32>} : memref<4x8x8xf32, #tpu.memory_space<vmem>>, vector<1x8x8xf32>,
    } else {
    }
    %c0 = arith.constant 0 : index
    %c0_1 = arith.constant 0 : index
    %c0_2 = arith.constant 0 : index
    %3 = vector.load %arg2[%c0, %c0_1, %c0_2] : memref<1x8x32xf32, #tpu.memory_space<vmem>>, vector<1x8x32xf32>
    %4 = vector.shape_cast %3 : vector<1x8x32xf32> to vector<8x32xf32>
    %5 = arith.truncf %4 : vector<8x32xf32> to vector<8x32xbf16>
    %c0_3 = arith.constant 0 : index
    %c0_4 = arith.constant 0 : index
    %6 = vector.load %arg7[%c0_3, %c0_4] : memref<32x32xf32, #tpu.memory_space<vmem>>, vector<32x32xf32>
    %7 = arith.truncf %6 : vector<32x32xf32> to vector<32x32xbf16>
    %cst = arith.constant dense<0.000000e+00> : vector<8x32xf32>
    %8 = tpu.matmul %5, %7, %cst {dimension_numbers = #tpu.dot_dimension_numbers<[1], [0], [0], [1], [0, 0, 1, 1], [], []>} : vector<8x32xbf16>, vector<32x32xbf16>, vector<8x32xf32> -> vector<8x32xf32>
    %c0_5 = arith.constant 0 : index
    %c0_6 = arith.constant 0 : index
    %9 = vector.load %arg8[%c0_5, %c0_6] : memref<1x32xf32, #tpu.memory_space<vmem>>, vector<1x32xf32>
    %10 = vector.broadcast %9 : vector<1x32xf32> to vector<8x32xf32>
    %11 = arith.addf %8, %10 : vector<8x32xf32>
    %12 = arith.truncf %11 : vector<8x32xf32> to vector<8x32xbf16>
    %c0_7 = arith.constant 0 : index
    %c0_8 = arith.constant 0 : index
    %c0_9 = arith.constant 0 : index
    %13 = vector.load %arg11[%c0_7, %c0_8, %c0_9] : memref<4x8x8xf32, #tpu.memory_space<vmem>>, vector<1x8x8xf32>
    %14 = vector.shape_cast %13 : vector<1x8x8xf32> to vector<8x8xf32>
    %15 = arith.truncf %14 : vector<8x8xf32> to vector<8x8xbf16>
    %16 = vector.extract_strided_slice %12 {offsets = [0, 0], sizes = [8, 8], strides = [1, 1]} : vector<8x32xbf16> to vector<8x8xbf16>
    %cst_10 = arith.constant dense<0.000000e+00> : vector<8x8xf32>
    %17 = tpu.matmul %15, %16, %cst_10 {dimension_numbers = #tpu.dot_dimension_numbers<[1], [0], [0], [1], [0, 0, 1, 1], [], []>} : vector<8x8xbf16>, vector<8x8xbf16>, vector<8x8xf32> -> vector<8x8xf32>
    %c1 = arith.constant 1 : index
    %c0_11 = arith.constant 0 : index
    %c0_12 = arith.constant 0 : index
    %18 = vector.load %arg11[%c1, %c0_11, %c0_12] : memref<4x8x8xf32, #tpu.memory_space<vmem>>, vector<1x8x8xf32>
    %19 = vector.shape_cast %18 : vector<1x8x8xf32> to vector<8x8xf32>
    %20 = arith.truncf %19 : vector<8x8xf32> to vector<8x8xbf16>
    %21 = vector.extract_strided_slice %12 {offsets = [0, 8], sizes = [8, 8], strides = [1, 1]} : vector<8x32xbf16> to vector<8x8xbf16>
    %cst_13 = arith.constant dense<0.000000e+00> : vector<8x8xf32>
    %22 = tpu.matmul %20, %21, %cst_13 {dimension_numbers = #tpu.dot_dimension_numbers<[1], [0], [0], [1], [0, 0, 1, 1], [], []>} : vector<8x8xbf16>, vector<8x8xbf16>, vector<8x8xf32> -> vector<8x8xf32>
    %c2 = arith.constant 2 : index
    %c0_14 = arith.constant 0 : index
    %c0_15 = arith.constant 0 : index
    %23 = vector.load %arg11[%c2, %c0_14, %c0_15] : memref<4x8x8xf32, #tpu.memory_space<vmem>>, vector<1x8x8xf32>
    %24 = vector.shape_cast %23 : vector<1x8x8xf32> to vector<8x8xf32>
    %25 = arith.truncf %24 : vector<8x8xf32> to vector<8x8xbf16>
    %26 = vector.extract_strided_slice %12 {offsets = [0, 16], sizes = [8, 8], strides = [1, 1]} : vector<8x32xbf16> to vector<8x8xbf16>
    %cst_16 = arith.constant dense<0.000000e+00> : vector<8x8xf32>
    %27 = tpu.matmul %25, %26, %cst_16 {dimension_numbers = #tpu.dot_dimension_numbers<[1], [0], [0], [1], [0, 0, 1, 1], [], []>} : vector<8x8xbf16>, vector<8x8xbf16>, vector<8x8xf32> -> vector<8x8xf32>
    %c3 = arith.constant 3 : index
    %c0_17 = arith.constant 0 : index
    %c0_18 = arith.constant 0 : index
    %28 = vector.load %arg11[%c3, %c0_17, %c0_18] : memref<4x8x8xf32, #tpu.memory_space<vmem>>, vector<1x8x8xf32>
    %29 = vector.shape_cast %28 : vector<1x8x8xf32> to vector<8x8xf32>
    %30 = arith.truncf %29 : vector<8x8xf32> to vector<8x8xbf16>
    %31 = vector.extract_strided_slice %12 {offsets = [0, 24], sizes = [8, 8], strides = [1, 1]} : vector<8x32xbf16> to vector<8x8xbf16>
    %cst_19 = arith.constant dense<0.000000e+00> : vector<8x8xf32>
    %32 = tpu.matmul %30, %31, %cst_19 {dimension_numbers = #tpu.dot_dimension_numbers<[1], [0], [0], [1], [0, 0, 1, 1], [], []>} : vector<8x8xbf16>, vector<8x8xbf16>, vector<8x8xf32> -> vector<8x8xf32>
    %33 = tpu.concatenate %17, %22, %27, %32 in 1 : vector<8x8xf32>, vector<8x8xf32>, vector<8x8xf32>, vector<8x8xf32> -> vector<8x32xf32>
    %34 = arith.truncf %33 : vector<8x32xf32> to vector<8x32xbf16>
    %c0_20 = arith.constant 0 : index
    %c0_21 = arith.constant 0 : index
    %35 = vector.load %arg9[%c0_20, %c0_21] : memref<32x32xf32, #tpu.memory_space<vmem>>, vector<32x32xf32>
    %36 = arith.truncf %35 : vector<32x32xf32> to vector<32x32xbf16>
    %cst_22 = arith.constant dense<0.000000e+00> : vector<8x32xf32>
    %37 = tpu.matmul %34, %36, %cst_22 {dimension_numbers = #tpu.dot_dimension_numbers<[1], [0], [0], [1], [0, 0, 1, 1], [], []>} : vector<8x32xbf16>, vector<32x32xbf16>, vector<8x32xf32> -> vector<8x32xf32>
    %c0_23 = arith.constant 0 : index
    %c0_24 = arith.constant 0 : index
    %38 = vector.load %arg10[%c0_23, %c0_24] : memref<1x32xf32, #tpu.memory_space<vmem>>, vector<1x32xf32>
    %39 = vector.broadcast %38 : vector<1x32xf32> to vector<8x32xf32>
    %40 = arith.addf %37, %39 : vector<8x32xf32>
    %c0_25 = arith.constant 0 : index
    %c0_26 = arith.constant 0 : index
    %c0_27 = arith.constant 0 : index
    %41 = vector.load %arg12[%c0_25, %c0_26, %c0_27] : memref<1x8x32xf32, #tpu.memory_space<vmem>>, vector<1x8x32xf32>
    %42 = vector.shape_cast %41 : vector<1x8x32xf32> to vector<8x32xf32>
    %43 = vector.shape_cast %40 : vector<8x32xf32> to vector<1x8x32xf32>
    tpu.vector_store %arg12[%c0_25, %c0_26, %c0_27], %43 {strides = array<i32>} : memref<1x8x32xf32, #tpu.memory_space<vmem>>, vector<1x8x32xf32>,
    return
  }
  func.func @transform_0(%arg0: i32) -> (i32, i32) {
    %c0_i32 = arith.constant 0 : i32
    %c0_i32_0 = arith.constant 0 : i32
    %c0_i32_1 = arith.constant 0 : i32
    return %c0_i32, %c0_i32_0 : i32, i32
  }
  func.func @transform_1(%arg0: i32) -> (i32, i32, i32) {
    %c0_i32 = arith.constant 0 : i32
    %c0_i32_0 = arith.constant 0 : i32
    %c0_i32_1 = arith.constant 0 : i32
    return %arg0, %c0_i32, %c0_i32_0 : i32, i32, i32
  }
  func.func @transform_2(%arg0: i32) -> (i32, i32) {
    %c0_i32 = arith.constant 0 : i32
    %c0_i32_0 = arith.constant 0 : i32
    %c0_i32_1 = arith.constant 0 : i32
    return %c0_i32, %c0_i32_0 : i32, i32
  }
  func.func @transform_3(%arg0: i32) -> (i32, i32) {
    %c0_i32 = arith.constant 0 : i32
    %c0_i32_0 = arith.constant 0 : i32
    %c0_i32_1 = arith.constant 0 : i32
    return %c0_i32, %c0_i32_0 : i32, i32
  }
  func.func @transform_4(%arg0: i32) -> (i32, i32, i32) {
    %c0_i32 = arith.constant 0 : i32
    %c0_i32_0 = arith.constant 0 : i32
    %c0_i32_1 = arith.constant 0 : i32
    %c0_i32_2 = arith.constant 0 : i32
    return %c0_i32, %c0_i32_0, %c0_i32_1 : i32, i32, i32
  }
  func.func @transform_5(%arg0: i32) -> (i32, i32, i32) {
    %c0_i32 = arith.constant 0 : i32
    %c0_i32_0 = arith.constant 0 : i32
    %c0_i32_1 = arith.constant 0 : i32
    %c0_i32_2 = arith.constant 0 : i32
    return %c0_i32, %c0_i32_0, %c0_i32_1 : i32, i32, i32
  }
  func.func @transform_6(%arg0: i32) -> (i32, i32) {
    %c0_i32 = arith.constant 0 : i32
    %c0_i32_0 = arith.constant 0 : i32
    %c0_i32_1 = arith.constant 0 : i32
    return %c0_i32, %c0_i32_0 : i32, i32
  }
  func.func @transform_7(%arg0: i32) -> (i32, i32) {
    %c0_i32 = arith.constant 0 : i32
    %c0_i32_0 = arith.constant 0 : i32
    %c0_i32_1 = arith.constant 0 : i32
    return %c0_i32, %c0_i32_0 : i32, i32
  }
  func.func @transform_8(%arg0: i32) -> (i32, i32) {
    %c0_i32 = arith.constant 0 : i32
    %c0_i32_0 = arith.constant 0 : i32
    %c0_i32_1 = arith.constant 0 : i32
    return %c0_i32, %c0_i32_0 : i32, i32
  }
  func.func @transform_9(%arg0: i32) -> (i32, i32) {
    %c0_i32 = arith.constant 0 : i32
    %c0_i32_0 = arith.constant 0 : i32
    %c0_i32_1 = arith.constant 0 : i32
    return %c0_i32, %c0_i32_0 : i32, i32
  }
  func.func @transform_10(%arg0: i32) -> (i32, i32, i32) {
    %c0_i32 = arith.constant 0 : i32
    %c0_i32_0 = arith.constant 0 : i32
    %c0_i32_1 = arith.constant 0 : i32
    %c0_i32_2 = arith.constant 0 : i32
    return %c0_i32, %c0_i32_0, %c0_i32_1 : i32, i32, i32
  }
  func.func @transform_11(%arg0: i32) -> (i32, i32, i32) {
    %c0_i32 = arith.constant 0 : i32
    %c0_i32_0 = arith.constant 0 : i32
    %c0_i32_1 = arith.constant 0 : i32
    return %arg0, %c0_i32, %c0_i32_0 : i32, i32, i32
  }
}

</mosaic_0001>

<bundles_post_ra>
// kernel: tpu_custom_call.1
= control target key start
LH: loop header
LB: loop body
LE: loop exit
PB: predicated region body
PF: predicated region fallthrough
CT: control target
= control target key end

     0   :  { %s3372_s0 = inlined_call_operand.hbm [shape: f32[8,32], index: 0, kind: input, shape index: {}]   ;;  %s3373_s1 = inlined_call_operand.hbm [shape: f32[2,8,32], index: 1, kind: input, shape index: {}]   ;;  %s3374_s2 = inlined_call_operand.vmem [shape: f32[32,64], index: 2, kind: input, shape index: {}]   ;;  %s3375_s3 = inlined_call_operand.vmem [shape: f32[1,64], index: 3, kind: input, shape index: {}]   ;;  %s3376_s4 = inlined_call_operand.hbm [shape: f32[4,8,12], index: 4, kind: input, shape index: {}]   ;;  %s3377_s5 = inlined_call_operand.vmem [shape: f32[4,3,12], index: 5, kind: input, shape index: {}]   ;;  %s3378_s6 = inlined_call_operand.hbm [shape: f32[32,32], index: 6, kind: input, shape index: {}]   ;;  %s3379_s7 = inlined_call_operand.vmem [shape: f32[1,32], index: 7, kind: input, shape index: {}]   ;;  %s3380_s8 = inlined_call_operand.hbm [shape: f32[32,32], index: 8, kind: input, shape index: {}]   ;;  %s3381_s9 = inlined_call_operand.vmem [shape: f32[1,32], index: 9, kind: input, shape index: {}]   ;;  %s3382_s10 = inlined_call_operand.hbm [shape: f32[4,8,8], index: 10, kind: output, shape index: {0}]   ;;  %s3383_s11 = inlined_call_operand.hbm [shape: f32[2,8,32], index: 11, kind: output, shape index: {1}]  }
   0x1   :  { %3390 = sst [smem:[#allocation20_spill]] %s3372_s0 }
   0x2   :  { %3391 = sst [smem:[#allocation21_spill]] %s3373_s1 }
   0x3   :  { %3392 = sst [smem:[#allocation22_spill]] %s3379_s7 }
   0x4   :  { %3393 = sst [smem:[#allocation23_spill]] %s3381_s9 }
   0x5   :  { %3394 = sst [smem:[#allocation24_spill]] %s3382_s10 }
   0x6   :  { %3395 = sst [smem:[#allocation25_spill]] %s3383_s11 }
   0x7   :  { %17 = vsyncpa [#allocation3], 0 }
   0x8   :  { %18 = vsyncpa [#allocation6], 0 }
   0x9   :  { %20 = vsyncpa [#allocation6 + $0x1], 0 }
   0xa   :  { %21 = vsyncpa [#allocation9], 0 }
   0xb   :  { %22 = vsyncpa [#allocation4], 0 }
   0xc   :  { %23 = vsyncpa [#allocation13], 0 }
   0xd   :  { %25 = vsyncpa [#allocation13 + $0x1], 0  ;;  %s2861_s17 = smov 0   ;;  %s2863_s18 = smov 0  }
   0xe   :  { %s2865_s19 = smov 0   ;;  %s2867_s20 = smov 0  }
   0xf LB: > { %s2773_s21 = smov [#allocation7]   ;;  %s2882_s23 = sadd.s32 4294967295, %s2771_s20   ;;  %s2771_s20 = sphi %s2867_s20, %s3431_s20   ;;  %s2767_s19 = sphi %s2865_s19, %s3430_s19   ;;  %s2763_s18 = sphi %s2863_s18, %s3429_s18   ;;  %s2759_s17 = sphi %s2861_s17, %s3428_s17  }
  0x10   : > { %s327_s22 = sshll.u32 %s2773_s21, 4  ;;  %p2163_p0 = scmp.ge.s32.totalorder %s2771_s20, 1  ;;  %s2889_s22 = int_to_ptr.vmem [resolvable:$true] %s327_s22 }
  0x11   : > { %p3384_p1 = scmp.eq.s32.totalorder %s2882_s23, 0  ;;  %p298_p3 = scmp.lt.s32.totalorder %s2771_s20, 3 }
  0x12   : > { %s2774_s25 = smov [#allocation8]   ;;  %s2775_s28 = smov [#allocation2]  }
  0x13   : > { %p2891_p5 = pnand %p2163_p0, %p298_p3  ;;  %s343_s26 = sshll.u32 %s2774_s25, 4  ;;  %s2898_s26 = int_to_ptr.vmem [resolvable:$true] %s343_s26 }
  0x14   : > { %s311_s29 = sshll.u32 %s2775_s28, 4  ;;  %s2776_s30 = smov [#allocation10]   ;;  %s2906_s29 = int_to_ptr.vmem [resolvable:$true] %s311_s29 }
  0x15   : > { %s3396_s24 = scalar_select %p2891_p5, 1, 0 }
  0x16   : > { %p2398_p7 = pneg %p2891_p5  ;;  %s2908_s12 = sshll.u32 %s2776_s30, 4  ;;  %s360_s12 = int_to_ptr.vmem [resolvable:$true] %s2908_s12 }
  0x17   : > { %s2521_s15 = scalar_lea.hbm %s3376_s4, 512 }
  0x18   : > { %p2902_p8 = pnand %p2398_p7, %p3384_p1  ;;  %p2522_p9 = scmp.ne.s32.totalorder %s3376_s4, %s2521_s15 }
  0x19   : > { %p2528_p13 = scmp.lt.u32.totalorder %s2521_s15, %s3376_s4 }
  0x1a   : > { %p2918_p10 = pneg %p2902_p8 }
  0x1c   : > { %p2524_p11 = pnand %p2918_p10, %p2522_p9 }
  0x1e   : > { %p2525_p12 = pneg %p2524_p11 }
  0x20   : > { %p2530_p0 = pnand %p2528_p13, %p2525_p12 }
  0x22   : > { %2533 = shalt.err (!%p2530_p0)
}
  0x23   : > { %s2534_s13 = scalar_lea.vmem %s2889_s22, 512  ;;  %p2542_p4 = scmp.lt.s32.totalorder %s2889_s22, %s2889_s22 }
  0x24   : > { %p2535_p3 = scmp.ne.s32.totalorder %s2889_s22, %s2534_s13  ;;  %p2543_p1 = scmp.lt.s32.totalorder %s2534_s13, %s2534_s13 }
  0x26   : > { %p2537_p7 = pnand %p2535_p3, %p2918_p10  ;;  %p2544_p9 = por %p2543_p1, %p2542_p4 }
  0x28   : > { %p2538_p6 = pneg %p2537_p7 }
  0x2a   : > { %p2545_p11 = pnand %p2544_p9, %p2538_p6 }
  0x2c   : > { %2548 = shalt.err (!%p2545_p11)
}
  0x2d   : > { %s2777_s14 = smov 128   ;;  %s2778_s15 = smov 8  }
  0x2e   : > { %2404 = dma.hbm_to_vmem [thread:$0]  (!%p2902_p8), %s3376_s4, 512, %s2889_s22, [#allocation6], %s2777_s14, %s2777_s14, %s2778_s15  }
  0x2f   : > { %s2549_s13 = scalar_lea.hbm %s3378_s6, 512 }
  0x30   : > { %p2550_p1 = scmp.ne.s32.totalorder %s3378_s6, %s2549_s13  ;;  %p2556_p12 = scmp.lt.u32.totalorder %s2549_s13, %s3378_s6 }
  0x32   : > { %p2552_p4 = pnand %p2550_p1, %p2918_p10 }
  0x34   : > { %p2553_p6 = pneg %p2552_p4 }
  0x36   : > { %p2558_p13 = pnand %p2556_p12, %p2553_p6 }
  0x38   : > { %2561 = shalt.err (!%p2558_p13)
}
  0x39   : > { %s2562_s22 = scalar_lea.vmem %s2898_s26, 512  ;;  %p2570_p9 = scmp.lt.s32.totalorder %s2898_s26, %s2898_s26 }
  0x3a   : > { %p2563_p0 = scmp.ne.s32.totalorder %s2898_s26, %s2562_s22  ;;  %p2571_p11 = scmp.lt.s32.totalorder %s2562_s22, %s2562_s22 }
  0x3c   : > { %p2565_p3 = pnand %p2563_p0, %p2918_p10  ;;  %p2572_p1 = por %p2571_p11, %p2570_p9 }
  0x3e   : > { %p2566_p7 = pneg %p2565_p3 }
  0x40   : > { %p2573_p4 = pnand %p2572_p1, %p2566_p7 }
  0x42   : > { %2576 = shalt.err (!%p2573_p4)
}
  0x43   : > { %2407 = dma.hbm_to_vmem [thread:$0]  (!%p2902_p8), %s3378_s6, 512, %s2898_s26, [#allocation9], %s2777_s14, %s2777_s14, %s2778_s15  }
  0x44   : > { %s3399_s0 = sld [smem:[#allocation20_spill]] }
  0x4a   : > { %s2577_s16 = scalar_lea.hbm %s3399_s0, 128 }
  0x4b   : > { %p2578_p6 = scmp.ne.s32.totalorder %s3399_s0, %s2577_s16  ;;  %p2584_p0 = scmp.lt.u32.totalorder %s2577_s16, %s3399_s0 }
  0x4d   : > { %p2580_p12 = pnand %p2578_p6, %p2918_p10 }
  0x4f   : > { %p2581_p13 = pneg %p2580_p12 }
  0x51   : > { %p2586_p3 = pnand %p2584_p0, %p2581_p13 }
  0x53   : > { %2589 = shalt.err (!%p2586_p3)
}
  0x54   : > { %s2590_s26 = scalar_lea.vmem %s2906_s29, 128  ;;  %p2598_p1 = scmp.lt.s32.totalorder %s2906_s29, %s2906_s29 }
  0x55   : > { %p2591_p7 = scmp.ne.s32.totalorder %s2906_s29, %s2590_s26  ;;  %p2599_p4 = scmp.lt.s32.totalorder %s2590_s26, %s2590_s26 }
  0x57   : > { %p2593_p9 = pnand %p2591_p7, %p2918_p10  ;;  %p2600_p6 = por %p2599_p4, %p2598_p1 }
  0x59   : > { %p2594_p11 = pneg %p2593_p9 }
  0x5b   : > { %p2601_p12 = pnand %p2600_p6, %p2594_p11 }
  0x5d   : > { %2604 = shalt.err (!%p2601_p12)
}
  0x5e   : > { %2401 = dma.hbm_to_vmem [thread:$0]  (!%p2902_p8), %s3399_s0, 128, %s2906_s29, [#allocation3]  }
  0x5f   : > { %s2605_s11 = scalar_lea.hbm %s3380_s8, 512 }
  0x60   : > { %p2606_p13 = scmp.ne.s32.totalorder %s3380_s8, %s2605_s11  ;;  %p2612_p7 = scmp.lt.u32.totalorder %s2605_s11, %s3380_s8 }
  0x62   : > { %p2608_p0 = pnand %p2606_p13, %p2918_p10 }
  0x64   : > { %p2609_p3 = pneg %p2608_p0 }
  0x66   : > { %p2614_p9 = pnand %p2612_p7, %p2609_p3 }
  0x68   : > { %2617 = shalt.err (!%p2614_p9)
}
  0x69   : > { %s2618_s13 = scalar_lea.vmem %s360_s12, 512  ;;  %p2626_p6 = scmp.lt.s32.totalorder %s360_s12, %s360_s12 }
  0x6a   : > { %p2619_p11 = scmp.ne.s32.totalorder %s360_s12, %s2618_s13  ;;  %p2627_p12 = scmp.lt.s32.totalorder %s2618_s13, %s2618_s13 }
  0x6c   : > { %p2621_p1 = pnand %p2619_p11, %p2918_p10  ;;  %p2628_p2 = por %p2627_p12, %p2626_p6 }
  0x6e   : > { %p2622_p4 = pneg %p2621_p1 }
  0x70   : > { %p2629_p5 = pnand %p2628_p2, %p2622_p4 }
  0x72   : > { %2632 = shalt.err (!%p2629_p5)
}
  0x73   : > { %2410 = dma.hbm_to_vmem [thread:$0]  (!%p2902_p8), %s3380_s8, 512, %s360_s12, [#allocation9], %s2777_s14, %s2777_s14, %s2778_s15  }
  0x74   : > { %s2162_s27 = sadd.s32 4294967294, %s2771_s20   ;;  %s3015_s25 = sadd.s32 1, %s2771_s20  }
  0x75   : > { %s59_s22 = sadd.s32 1, %s2767_s19  ;;  %s56_s7 = ssub.s32 %s2771_s20, %s3015_s25 }
  0x76   : > { %p66_p2 = scmp.ne.s32.totalorder %s2767_s19, %s2763_s18  ;;  %p57_p5 = scmp.eq.s32.totalorder %s56_s7, 0 }
  0x77   : > { %p67_p10 = scmp.eq.s32.totalorder %s2771_s20, 0  ;;  %p72_p13 = scmp.ne.s32.totalorder %s2763_s18, %s2759_s17 }
  0x78   : > { %p3400_p0 = scmp.eq.s32.totalorder %s2882_s23, 1  ;;  %p3402_p7 = scmp.eq.s32.totalorder %s2882_s23, 0 }
  0x79   : > { %s3032_s10 = scalar_select %p57_p5, %s2767_s19, %s59_s22  }
  0x7a   : > { %p3027_p3 = por %p3400_p0, %p66_p2  ;;  %p68_p8 = por %p67_p10, %p66_p2 }
  0x7b   : > { %p3036_p9 = por %p3402_p7, %p72_p13  ;;  %p291_p11 = scmp.eq.s32.totalorder %s2162_s27, 1 }
  0x7c   : > { %s3401_s9 = scalar_select %p3027_p3, 1, 0 }
  0x7d   : > { %p2423_p1 = scmp.lt.s32.totalorder %s2771_s20, 2  ;;  %s376_s14 = sand.u32 1, %s2771_s20  }
  0x7e   : > { %s378_s15 = sand.u32 1, %s2767_s19   ;;  %p3043_p4 = por %p291_p11, %p72_p13 }
  0x7f   : > { %s2169_s16 = sshll.u32 %s378_s15, 3  ;;  %s2170_s21 = sshll.u32 %s2771_s20, 7 }
  0x80   : > { %s3404_s11 = scalar_select %p3043_p4, 1, 0 }
  0x81   : > { %s3405_s1 = sld [smem:[#allocation21_spill]]  ;;  %s380_s29 = scalar_lea.vmem [#allocation5], %s2169_s16 }
  0x82   : > { %s387_s26 = sshll.u32 %s380_s29, 4  ;;  %p3053_p6 = pnand %p2423_p1, %p68_p8  ;;  %s3057_s26 = int_to_ptr.vmem [resolvable:$true] %s387_s26 }
  0x83   : > { %s377_s22 = scalar_lea.sflag [#allocation6], %s376_s14 }
  0x84   : > { %p2635_p2 = pneg %p3053_p6 }
  0x87   : > { %s3051_s13 = scalar_lea.hbm %s3405_s1, %s2170_s21  ;;  %s2638_s21 = scalar_lea.hbm %s3405_s1, 256 }
  0x88   : > { %s2633_s7 = scalar_lea.hbm %s3051_s13, 128  ;;  %p2639_p13 = scmp.lt.u32.totalorder %s3051_s13, %s3405_s1 }
  0x89   : > { %p2634_p12 = scmp.ne.s32.totalorder %s3051_s13, %s2633_s7  ;;  %p2640_p0 = scmp.lt.u32.totalorder %s2638_s21, %s2633_s7 }
  0x8a   : > { %p2642_p7 = scmp.lt.u32.totalorder %s2633_s7, %s3051_s13 }
  0x8b   : > { %p2636_p5 = pnand %p2635_p2, %p2634_p12  ;;  %p2641_p8 = por %p2640_p0, %p2639_p13 }
  0x8d   : > { %p2637_p10 = pneg %p2636_p5  ;;  %p2643_p11 = por %p2642_p7, %p2641_p8 }
  0x8f   : > { %p2644_p1 = pnand %p2643_p11, %p2637_p10 }
  0x91   : > { %2647 = shalt.err (!%p2644_p1)
}
  0x92   : > { %s2648_s14 = scalar_lea.vmem %s3057_s26, 128  ;;  %s2779_s29 = smov [#allocation5]  }
  0x93   : > { %p2649_p12 = scmp.ne.s32.totalorder %s3057_s26, %s2648_s14  ;;  %s2653_s15 = sshll.u32 %s2779_s29, 4  ;;  %s2654_s15 = int_to_ptr.vmem [resolvable:$false] %s2653_s15 }
  0x94   : > { %s2655_s16 = scalar_lea.vmem %s2654_s15, 256  ;;  %p2656_p3 = scmp.lt.s32.totalorder %s3057_s26, %s2654_s15 }
  0x95   : > { %p2651_p5 = pnand %p2649_p12, %p2635_p2  ;;  %p2657_p13 = scmp.lt.s32.totalorder %s2655_s16, %s2648_s14 }
  0x97   : > { %p2652_p4 = pneg %p2651_p5  ;;  %p2658_p0 = por %p2657_p13, %p2656_p3 }
  0x99   : > { %p2659_p8 = pnand %p2658_p0, %p2652_p4 }
  0x9b   : > { %2662 = shalt.err (!%p2659_p8)
}
  0x9c   : > { %2414 = dma.hbm_to_vmem [thread:$0]  (!%p3053_p6), %s3051_s13, 128, %s3057_s26, %s377_s22  }
  0x9d   : > { %p3407_p10 = scmp.ne.s32.totalorder %s3396_s24, 0 }
  0x9e   : > { %p3408_p2 = scmp.eq.s32.totalorder (!%p3407_p10), %s2882_s23, 0 }
  0x9f   : > { %396 = sbr.rel (%p3407_p10) target bundleno = 2924 (0xb6c), region = 60 }
  0xa6   : > { %2734 = dma.done.wait (%p3408_p2), [#allocation3], 128   ;;  %p3409_p7 = pmov %p3408_p2 }
  0xa7   : > { %s402_s7 = sand.u32 1, %s2882_s23   ;;  %s3389_s21 = sand.u32 1, %s2763_s18  }
  0xa8   : > { %2736 = vsyncadd (%p3409_p7), [#allocation3], 4294967168  ;;  %s3094_s27 = sshll.u32 %s3389_s21, 3  ;;  %s403_s13 = scalar_lea.sflag [#allocation6], %s402_s7 }
  0xa9   : > { %s406_s26 = scalar_lea.vmem [#allocation5], %s3094_s27 }
  0xaa   : > { %2738 = dma.done.wait (%p3036_p9), %s403_s13, 128  }
  0xab   : > { %2740 = vsyncadd (%p3036_p9), %s403_s13, 4294967168  ;;  %p3410_p3 = pmov %p3408_p2 }
  0xac   : > { %p3411_p4 = pmov %p3408_p2 }
  0xad   : > { %2742 = dma.done.wait (%p3410_p3), [#allocation6], 512  }
  0xae   : > { %2744 = vsyncadd (%p3411_p4), [#allocation6], 4294966784  ;;  %p3412_p6 = pmov %p3408_p2 }
  0xaf   : > { %p3413_p11 = pmov %p3408_p2 }
  0xb0   : > { %2746 = dma.done.wait (%p3412_p6), [#allocation9], 1024  }
  0xb1   : > { %2748 = vsyncadd (%p3413_p11), [#allocation9], 4294966272  ;;  %s456_s24 = scalar_lea.vmem [#allocation12], %s3094_s27  ;;  %p3414_p1 = scmp.ne.s32.totalorder %s2882_s23, 0 }
  0xb2   : > { %v463_v0 = vld [vmem:[%s3374_s2] sm:$0xff] (!%p3414_p1)  ;;  %v464_v1 = vld [vmem:[%s3374_s2 + $0x8] sm:$0xff] (!%p3414_p1)  ;;  %v465_v2 = vld [vmem:[%s3374_s2 + $0x10] sm:$0xff] (!%p3414_p1)  ;;  %v2780_v3 = vmov (!%p3414_p1), 0.0|0.0   ;;  %vm2781_vm0 = vmmov (!%p3414_p1), 0   ;;  %v2782_v6 = vmov (!%p3414_p1), 0.0   ;;  %v562_v36 = vlaneseq (!%p3414_p1) }
  0xb3   : > { %461 = sbr.rel (%p3414_p1) target bundleno = 2008 (0x7d8), region = 84  ;;  %2368 = vmatprep.subr.bf16.mxu0 (!%p3414_p1), %v2780_v3  ;;  %v2369_v4 = vpack.c.bf16 (!%p3414_p1), %v464_v1, %v463_v0  ;;  %v466_v5 = vld [vmem:[%s3374_s2 + $0x18] sm:$0xff] (!%p3414_p1)  ;;  %2265 = vmatprep.mubr.msk.f32.mxu0 (!%p3414_p1), %vm2781_vm0, %v2782_v6  ;;  %v462_v8 = vld [vmem:[#allocation2] sm:$0xff] (!%p3414_p1)  ;;  %vm474_vm1 = vcmask (!%p3414_p1), 261120   ;;  %vm551_vm2 = vcmask (!%p3414_p1), 64512   ;;  %s2783_s22 = smov (!%p3414_p1), 96  }
  0xb4   : > { %2268 = vmatprep.subr.mxu1 (!%p3414_p1), %v2782_v6  ;;  %2270 = vmatprep.mubr.msk.f32.mxu1 (!%p3414_p1), %vm2781_vm0, %v2782_v6  ;;  %v2372_v7 = vpack.c.bf16 (!%p3414_p1), %v466_v5, %v465_v2  ;;  %v548_v9 = vld [vmem:[#allocation7] sm:$0xff] (!%p3414_p1)  ;;  %v2179_v10 = vld [vmem:[%s3375_s3] ss:$0 sm:$0xff] (!%p3414_p1)  ;;  %s2784_s12 = smov (!%p3414_p1), 88   ;;  %s2785_s28 = smov (!%p3414_p1), 120   ;;  %v563_v37 = vshrl.u32 (!%p3414_p1), %v562_v36, 7 }
  0xb5   : > { %2370 = vmatpush3.bf16.msra.mxu0 (!%p3414_p1), %v2369_v4  ;;  %2269 = vmatpush3.msra.mxu1 (!%p3414_p1), %v548_v9  ;;  %v3148_v22 = vld [vmem:[#allocation7 + $0x8] sm:$0xff] (!%p3414_p1)  ;;  %s2786_s30 = smov (!%p3414_p1), 80   ;;  %s2787_s14 = smov (!%p3414_p1), 112   ;;  %vm738_vm3 = vcmask (!%p3414_p1), 97280   ;;  %v1110_v1 = vld [vmem:[#allocation7 + $0x10] sm:$0xff] (!%p3414_p1) }
  0xb6   : > { %2371 = vmatprep.subr.bf16.mxu0 (!%p3414_p1), %v2780_v3  ;;  %2273 = vmatprep.subr.mxu1 (!%p3414_p1), %v2782_v6  ;;  %s2788_s29 = smov (!%p3414_p1), 104   ;;  %s2789_s15 = smov (!%p3414_p1), 72   ;;  %v3162_v38 = vsub.s32 (!%p3414_p1), 2, %v563_v37  ;;  %v549_v39 = vld [vmem:[%s3377_s5] sm:$0x7] (!%p3414_p1)  ;;  %v3168_v44 = vsub.s32 (!%p3414_p1), 0, %v563_v37 }
  0xb7   : > { %v3171_v59 = vsub.s32 (!%p3414_p1), 1, %v563_v37 }
  0xb8   : > { %v565_v40 = vrot.slane (!%p3414_p1), %v549_v39, %v3162_v38  ;;  %v725_v46 = vrot.slane (!%p3414_p1), %v549_v39, %v3168_v44 }
  0xb9   : > { %2373 = vmatpush3.bf16.msra.mxu0 (!%p3414_p1), %v2372_v7  ;;  %v736_v60 = vrot.slane (!%p3414_p1), %v549_v39, %v3171_v59 }
  0xba   : > { %2283 = vmatprep.subr.mxu0 %v2782_v6 }
  0xbc   : > { %2266 = vmatmul.mubr.msk.f32.vlgmr.msra.gmra.mrb[0].mxu0 %vm474_vm1, %v462_v8 }
  0xbd   : > { %2285 = vmatprep.mubr.msk.f32.mxu0 %vm2781_vm0, %v2782_v6  ;;  %2284 = vmatpush3.msra.mxu0 %v3148_v22 }
  0xbe   : > { %2293 = vmatprep.subr.mxu0 %v2782_v6 }
 0x18f   : > { %v544_v11 = vpop.f32.mrb[0].mxu0 }
 0x190   : > { %v545_v12 = vadd.f32 %v2179_v10, %v544_v11  ;;  %v2267_v13 = vpop.f32.mrb[1].mxu0 }
 0x192   : > { %644 = vrot.lane.b32.xlu0 %v545_v12, %s2783_s22  ;;  %2271 = vmatmul.mubr.msk.f32.vlgmr.msra.gmra.mrb[0].mxu1 %vm551_vm2, %v545_v12  ;;  %v550_v14 = vmul.f32 %v545_v12, %v545_v12 }
 0x193   : > { %2274 = vmatpush3.msra.mxu1 %v548_v9  ;;  %2275 = vmatprep.mubr.msk.f32.mxu1 %vm2781_vm0, %v2782_v6 }
 0x194   : > { %2278 = vmatprep.subr.mxu1 %v2782_v6  ;;  %v552_v19 = vsel %vm551_vm2, %v550_v14, 0.0 }
 0x196   : > { %556 = vrot.lane.b32.xlu0 %v550_v14, %s2783_s22 }
 0x19a   : > { %926 = vrot.lane.b32.xlu0 %v545_v12, %s2784_s12 }
 0x19e   : > { %837 = vrot.lane.b32.xlu0 %v550_v14, %s2784_s12 }
 0x1a2   : > { %831 = vrot.lane.b32.xlu0 %v550_v14, %s2785_s28 }
 0x204   : > { %v645_v15 = vpop.permute.xlu0 %644 }
 0x205   : > { %2276 = vmatmul.mubr.msk.f32.vlgmr.msra.gmra.mrb[2].mxu1 %vm551_vm2, %v645_v15 }
 0x206   : > { %2280 = vmatprep.mubr.msk.f32.mxu1 %vm2781_vm0, %v2782_v6 }
 0x208   : > { %v557_v16 = vpop.permute.xlu0 %556 }
 0x209   : > { %v559_v17 = vsel %vm551_vm2, %v557_v16, 0.0 }
 0x20a   : > { %560 = vadd.xlane.f32.xlu1 %v559_v17 }
 0x20c   : > { %v3144_v18 = vpop.permute.xlu0 %926 }
 0x20e   : > { %553 = vadd.xlane.f32.xlu1 %v552_v19 }
 0x210   : > { %v838_v20 = vpop.permute.xlu0 %837 }
 0x211   : > { %v840_v21 = vsel %vm551_vm2, %v838_v20, 0.0 }
 0x212   : > { %841 = vadd.xlane.f32.xlu0 %v840_v21 }
 0x214   : > { %v832_v23 = vpop.permute.xlu0 %831 }
 0x215   : > { %v834_v24 = vsel %vm551_vm2, %v832_v23, 0.0 }
 0x21f   : > { %848 = vrot.lane.b32.xlu1 %v545_v12, %s2785_s28 }
 0x228   : > { %1208 = vrot.lane.b32.xlu0 %v545_v12, %s2786_s30 }
 0x22c   : > { %1119 = vrot.lane.b32.xlu0 %v550_v14, %s2786_s30 }
 0x230   : > { %1113 = vrot.lane.b32.xlu0 %v550_v14, %s2787_s14 }
 0x243   : > { %835 = vadd.xlane.f32.xlu1 %v834_v24  ;;  %v3204_v24 = vld [vmem:[%s3377_s5 + $0x8] sm:$0x7] }
 0x254   : > { %1130 = vrot.lane.b32.xlu1 %v545_v12, %s2787_s14 }
 0x265   : > { %v636_v25 = vpop.f32.mrb[0].mxu1 }
 0x266   : > { %v2272_v26 = vpop.f32.mrb[1].mxu1  ;;  %v640_v42 = vmul.f32 2.0, %v636_v25 }
 0x297   : > { %v561_v27 = vpop.xlane.xlu1 %560 }
 0x298   : > { %v643_v49 = vadd.f32 %v565_v40, %v561_v27 }
 0x29b   : > { %v554_v28 = vpop.xlane.xlu1 %553 }
 0x29c   : > { %v566_v41 = vadd.f32 %v565_v40, %v554_v28 }
 0x29e   : > { %v641_v43 = vsub.f32 %v566_v41, %v640_v42 }
 0x29f   : > { %v3153_v29 = vpop.xlane.xlu0 %841  ;;  %v849_v30 = vpop.permute.xlu1 %848 }
 0x2a0   : > { %2286 = vmatmul.mubr.msk.f32.vlgmr.msra.gmra.mrb[2].mxu0 %vm551_vm2, %v849_v30  ;;  %v642_v45 = vmax.f32 %v641_v43, 0.0 }
 0x2a1   : > { %2295 = vmatprep.mubr.msk.f32.mxu0 %vm2781_vm0, %v2782_v6 }
 0x2a2   : > { %v721_v47 = vmul.f32 -0.5, %v642_v45 }
 0x2a3   : > { %v3158_v31 = vpop.permute.xlu0 %1208 }
 0x2a4   : > { %v726_v53 = vmul.f32 %v725_v46, %v721_v47 }
 0x2a6   : > { %v727_v56 = vmul.f32 1.442695, %v726_v53 }
 0x2a7   : > { %v1120_v32 = vpop.permute.xlu0 %1119 }
 0x2a8   : > { %v1122_v33 = vsel %vm551_vm2, %v1120_v32, 0.0  ;;  %2489 = vpow2.f32 %v727_v56  ;;  %v1128_v32 = vrot.slane %v3204_v24, %v3162_v38 }
 0x2a9   : > { %1123 = vadd.xlane.f32.xlu1 %v1122_v33 }
 0x2ab   : > { %v1114_v34 = vpop.permute.xlu0 %1113 }
 0x2ac   : > { %v1116_v35 = vsel %vm551_vm2, %v1114_v34, 0.0 }
 0x2ad   : > { %1117 = vadd.xlane.f32.xlu0 %v1116_v35 }
 0x2b2   : > { %v2490_v61 = vpop.eup %2489 }
 0x2b3   : > { %v737_v63 = vmul.f32 %v2490_v61, %v736_v60  ;;  %v1289_v61 = vrot.slane %v3204_v24, %v3168_v44 }
 0x2ba   : > { %1412 = vrot.lane.b32.xlu1 %v545_v12, %s2788_s29 }
 0x2be   : > { %1401 = vrot.lane.b32.xlu1 %v550_v14, %s2789_s15 }
 0x2c3   : > { %1490 = vrot.lane.b32.xlu0 %v545_v12, %s2789_s15  ;;  %v2185_v12 = vld [vmem:[%s3377_s5 + $0x4] sm:$0x7] }
 0x2c4   : > { %v846_v13 = vrot.slane %v2185_v12, %v3162_v38  ;;  %v1007_v23 = vrot.slane %v2185_v12, %v3168_v44 }
 0x2c6   : > { %v925_v27 = vadd.f32 %v846_v13, %v3153_v29  ;;  %v1018_v29 = vrot.slane %v2185_v12, %v3171_v59 }
 0x2c7   : > { %1395 = vrot.lane.b32.xlu0 %v550_v14, %s2788_s29 }
 0x2d0   : > { %v836_v0 = vpop.xlane.xlu1 %835 }
 0x2d1   : > { %v847_v15 = vadd.f32 %v846_v13, %v836_v0 }
 0x2d4   : > { %v1131_v2 = vpop.permute.xlu1 %1130 }
 0x2d8   : > { %v714_v48 = vpop.f32.mrb[2].mxu1 }
 0x2d9   : > { %v718_v50 = vmul.f32 2.0, %v714_v48  ;;  %v2277_v51 = vpop.f32.mrb[3].mxu1 }
 0x2db   : > { %v719_v52 = vsub.f32 %v643_v49, %v718_v50  ;;  %v1392_v50 = vld [vmem:[#allocation7 + $0x18] sm:$0xff] }
 0x2dd   : > { %v720_v54 = vmax.f32 %v719_v52, 0.0 }
 0x2df   : > { %v729_v55 = vmul.f32 -0.5, %v720_v54 }
 0x2e1   : > { %v730_v57 = vmul.f32 %v729_v55, %v725_v46 }
 0x2e3   : > { %v731_v58 = vmul.f32 1.442695, %v730_v57 }
 0x2e5   : > { %2491 = vpow2.f32 %v731_v58 }
 0x2ef   : > { %v2492_v62 = vpop.eup %2491 }
 0x2f0   : > { %2279 = vmatpush3.xpose.msk.msra.mxu1 %vm738_vm3, %v2492_v62 }
 0x2f1   : > { %2288 = vmatprep.subr.mxu1 %v2782_v6 }
 0x2f3   : > { %2281 = vmatmul.mubr.msk.f32.vlgmr.msra.gmra.mrb[4].mxu1 %vm738_vm3, %v737_v63 }
 0x2f4   : > { %2289 = vmatpush3.msra.mxu1 %v3148_v22  ;;  %2290 = vmatprep.mubr.msk.f32.mxu1 %vm2781_vm0, %v2782_v6 }
 0x2f5   : > { %2298 = vmatprep.subr.mxu1 %v2782_v6 }
 0x2f7   : > { %2291 = vmatmul.mubr.msk.f32.vlgmr.msra.gmra.mrb[6].mxu1 %vm551_vm2, %v3144_v18 }
 0x2f8   : > { %2299 = vmatpush3.msra.mxu1 %v1110_v1  ;;  %2300 = vmatprep.mubr.msk.f32.mxu1 %vm2781_vm0, %v2782_v6 }
 0x2f9   : > { %2308 = vmatprep.subr.mxu1 %v2782_v6 }
 0x2fb   : > { %2301 = vmatmul.mubr.msk.f32.vlgmr.msra.gmra.mrb[8].mxu1 %vm551_vm2, %v1131_v2 }
 0x2fc   : > { %2310 = vmatprep.mubr.msk.f32.mxu1 %vm2781_vm0, %v2782_v6 }
 0x336   : > { %v3189_v3 = vpop.xlane.xlu1 %1123 }
 0x337   : > { %v1207_v0 = vadd.f32 %v1128_v32, %v3189_v3 }
 0x33a   : > { %v1118_v4 = vpop.xlane.xlu0 %1117  ;;  %v1413_v5 = vpop.permute.xlu1 %1412 }
 0x33b   : > { %v1129_v36 = vadd.f32 %v1128_v32, %v1118_v4 }
 0x33e   : > { %v3191_v7 = vpop.permute.xlu0 %1490  ;;  %v1402_v8 = vpop.permute.xlu1 %1401 }
 0x33f   : > { %v1404_v9 = vsel %vm551_vm2, %v1402_v8, 0.0 }
 0x340   : > { %1405 = vadd.xlane.f32.xlu1 %v1404_v9 }
 0x342   : > { %v1396_v10 = vpop.permute.xlu0 %1395 }
 0x343   : > { %v1398_v11 = vsel %vm551_vm2, %v1396_v10, 0.0 }
 0x344   : > { %1399 = vadd.xlane.f32.xlu0 %v1398_v11 }
 0x373   : > { %v918_v14 = vpop.f32.mrb[2].mxu0 }
 0x374   : > { %v922_v16 = vmul.f32 2.0, %v918_v14  ;;  %v2287_v17 = vpop.f32.mrb[3].mxu0 }
 0x376   : > { %v923_v18 = vsub.f32 %v847_v15, %v922_v16  ;;  %v1300_v15 = vrot.slane %v3204_v24, %v3171_v59 }
 0x378   : > { %v924_v19 = vmax.f32 %v923_v18, 0.0 }
 0x37a   : > { %v1003_v25 = vmul.f32 -0.5, %v924_v19 }
 0x37c   : > { %v1008_v34 = vmul.f32 %v1007_v23, %v1003_v25 }
 0x37e   : > { %v1009_v43 = vmul.f32 1.442695, %v1008_v34 }
 0x380   : > { %2493 = vpow2.f32 %v1009_v43 }
 0x38a   : > { %v2494_v47 = vpop.eup %2493 }
 0x38b   : > { %v1019_v49 = vmul.f32 %v2494_v47, %v1018_v29 }
 0x3c6   : > { %v811_v20 = vpop.f32.mrb[4].mxu1 }
 0x3c7   : > { %v2282_v21 = vpop.f32.mrb[5].mxu1  ;;  %v815_v22 = vsel %vm551_vm2, %v811_v20, -inf }
 0x3c8   : > { %816 = vmax.xlane.f32.xlu0 %v815_v22 }
 0x3ca   : > { %v996_v26 = vpop.f32.mrb[6].mxu1 }
 0x3cb   : > { %v1000_v28 = vmul.f32 2.0, %v996_v26  ;;  %v2292_v30 = vpop.f32.mrb[7].mxu1 }
 0x3cd   : > { %v1001_v33 = vsub.f32 %v925_v27, %v1000_v28  ;;  %v1406_v18 = vpop.xlane.xlu1 %1405 }
 0x3ce   : > { %v1200_v35 = vpop.f32.mrb[8].mxu1 }
 0x3cf   : > { %v1002_v37 = vmax.f32 %v1001_v33, 0.0  ;;  %v1204_v39 = vmul.f32 2.0, %v1200_v35  ;;  %v2302_v40 = vpop.f32.mrb[9].mxu1 }
 0x3d1   : > { %v1011_v41 = vmul.f32 -0.5, %v1002_v37  ;;  %v1205_v42 = vsub.f32 %v1129_v36, %v1204_v39  ;;  %v1400_v51 = vpop.xlane.xlu0 %1399 }
 0x3d3   : > { %v1012_v45 = vmul.f32 %v1011_v41, %v1007_v23 }
 0x3d5   : > { %v1013_v46 = vmul.f32 1.442695, %v1012_v45 }
 0x3d7   : > { %2495 = vpow2.f32 %v1013_v46 }
 0x3e1   : > { %v2496_v48 = vpop.eup %2495 }
 0x3e2   : > { %2294 = vmatpush3.xpose.msk.msra.mxu0 %vm738_vm3, %v2496_v48 }
 0x3e3   : > { %2303 = vmatprep.subr.mxu0 %v2782_v6 }
 0x3e5   : > { %2296 = vmatmul.mubr.msk.f32.vlgmr.msra.gmra.mrb[4].mxu0 %vm738_vm3, %v1019_v49 }
 0x3e6   : > { %2304 = vmatpush3.msra.mxu0 %v1110_v1  ;;  %2305 = vmatprep.mubr.msk.f32.mxu0 %vm2781_vm0, %v2782_v6 }
 0x3e7   : > { %2313 = vmatprep.subr.mxu0 %v2782_v6 }
 0x3e9   : > { %2306 = vmatmul.mubr.msk.f32.vlgmr.msra.gmra.mrb[6].mxu0 %vm551_vm2, %v3158_v31  ;;  %v1206_v31 = vmax.f32 %v1205_v42, 0.0 }
 0x3ea   : > { %2314 = vmatpush3.msra.mxu0 %v1392_v50  ;;  %2315 = vmatprep.mubr.msk.f32.mxu0 %vm2781_vm0, %v2782_v6 }
 0x3eb   : > { %2323 = vmatprep.subr.mxu0 %v2782_v6  ;;  %v1285_v62 = vmul.f32 -0.5, %v1206_v31 }
 0x3ed   : > { %2316 = vmatmul.mubr.msk.f32.vlgmr.msra.gmra.mrb[8].mxu0 %vm551_vm2, %v1413_v5  ;;  %v1290_v5 = vmul.f32 %v1289_v61, %v1285_v62 }
 0x3ee   : > { %2325 = vmatprep.mubr.msk.f32.mxu0 %vm2781_vm0, %v2782_v6 }
 0x3ef   : > { %v1291_v12 = vmul.f32 1.442695, %v1290_v5 }
 0x455   : > { %v817_v52 = vpop.xlane.xlu0 %816 }
 0x456   : > { %v818_v53 = vsub.f32 %v811_v20, %v817_v52 }
 0x458   : > { %v819_v54 = vmul.f32 1.442695, %v818_v53 }
 0x45a   : > { %2497 = vpow2.f32 %v819_v54 }
 0x45b   : > { %2499 = vpow2.f32 %v1291_v12 }
 0x464   : > { %v2498_v55 = vpop.eup %2497 }
 0x465   : > { %v821_v56 = vsel %vm551_vm2, %v2498_v55, 0.0  ;;  %v2500_v16 = vpop.eup %2499 }
 0x466   : > { %822 = vadd.xlane.f32.xlu1 %v821_v56  ;;  %v1301_v3 = vmul.f32 %v2500_v16, %v1300_v15 }
 0x4b8   : > { %v1092_v57 = vpop.f32.mrb[4].mxu0 }
 0x4b9   : > { %v2297_v58 = vpop.f32.mrb[5].mxu0  ;;  %v1096_v60 = vsel %vm551_vm2, %v1092_v57, -inf }
 0x4ba   : > { %1097 = vmax.xlane.f32.xlu0 %v1096_v60 }
 0x4bc   : > { %v1278_v63 = vpop.f32.mrb[6].mxu0 }
 0x4bd   : > { %v1282_v1 = vmul.f32 2.0, %v1278_v63  ;;  %v2307_v2 = vpop.f32.mrb[7].mxu0 }
 0x4bf   : > { %v1283_v4 = vsub.f32 %v1207_v0, %v1282_v1 }
 0x4c0   : > { %v1482_v8 = vpop.f32.mrb[8].mxu0 }
 0x4c1   : > { %v1284_v9 = vmax.f32 %v1283_v4, 0.0  ;;  %v2317_v10 = vpop.f32.mrb[9].mxu0  ;;  %v1486_v27 = vmul.f32 2.0, %v1482_v8 }
 0x4c3   : > { %v1293_v11 = vmul.f32 -0.5, %v1284_v9 }
 0x4c5   : > { %v1294_v13 = vmul.f32 %v1293_v11, %v1289_v61 }
 0x4c7   : > { %v1295_v14 = vmul.f32 1.442695, %v1294_v13 }
 0x4c9   : > { %2501 = vpow2.f32 %v1295_v14 }
 0x4d3   : > { %v2502_v17 = vpop.eup %2501 }
 0x4d4   : > { %2309 = vmatpush3.xpose.msk.msra.mxu1 %vm738_vm3, %v2502_v17 }
 0x4d5   : > { %2318 = vmatprep.subr.mxu1 %v2782_v6 }
 0x4d7   : > { %2311 = vmatmul.mubr.msk.f32.vlgmr.msra.gmra.mrb[10].mxu1 %vm738_vm3, %v1301_v3 }
 0x4d8   : > { %2319 = vmatpush3.msra.mxu1 %v1392_v50  ;;  %2320 = vmatprep.mubr.msk.f32.mxu1 %vm2781_vm0, %v2782_v6  ;;  %v2195_v6 = vld [vmem:[%s3377_s5 + $0xc] sm:$0x7] }
 0x4d9   : > { %v1571_v36 = vrot.slane %v2195_v6, %v3168_v44  ;;  %v1582_v49 = vrot.slane %v2195_v6, %v3171_v59 }
 0x4db   : > { %2321 = vmatmul.mubr.msk.f32.vlgmr.msra.gmra.mrb[12].mxu1 %vm551_vm2, %v3191_v7  ;;  %v1410_v7 = vrot.slane %v2195_v6, %v3162_v38 }
 0x4dd   : > { %v1411_v28 = vadd.f32 %v1410_v7, %v1400_v51  ;;  %v1489_v40 = vadd.f32 %v1410_v7, %v1406_v18 }
 0x4df   : > { %v1487_v30 = vsub.f32 %v1411_v28, %v1486_v27 }
 0x4e1   : > { %v1488_v32 = vmax.f32 %v1487_v30, 0.0 }
 0x4e3   : > { %v1567_v37 = vmul.f32 -0.5, %v1488_v32 }
 0x4e5   : > { %v1572_v45 = vmul.f32 %v1571_v36, %v1567_v37 }
 0x4e7   : > { %v1573_v29 = vmul.f32 1.442695, %v1572_v45 }
 0x4f3   : > { %v823_v19 = vpop.xlane.xlu1 %822 }
 0x4f4   : > { %2503 = vrcp.f32 %v823_v19 }
 0x4fe   : > { %v2504_v20 = vpop.eup %2503 }
 0x4ff   : > { %v825_v21 = vmul.f32 %v2504_v20, %v2498_v55 }
 0x501   : > { %826 = vst.msk [vmem:[#allocation11] sm:$0xff] %vm551_vm2, %v825_v21 }
 0x547   : > { %v1098_v22 = vpop.xlane.xlu0 %1097 }
 0x548   : > { %v1099_v23 = vsub.f32 %v1092_v57, %v1098_v22 }
 0x54a   : > { %v1100_v24 = vmul.f32 1.442695, %v1099_v23 }
 0x54c   : > { %2505 = vpow2.f32 %v1100_v24 }
 0x54d   : > { %2507 = vpow2.f32 %v1573_v29 }
 0x556   : > { %v2506_v25 = vpop.eup %2505 }
 0x557   : > { %v1102_v26 = vsel %vm551_vm2, %v2506_v25, 0.0  ;;  %v2508_v50 = vpop.eup %2507 }
 0x558   : > { %1103 = vadd.xlane.f32.xlu1 %v1102_v26  ;;  %v1583_v44 = vmul.f32 %v2508_v50, %v1582_v49 }
 0x5aa   : > { %v1374_v33 = vpop.f32.mrb[10].mxu1 }
 0x5ab   : > { %v2312_v34 = vpop.f32.mrb[11].mxu1  ;;  %v1378_v35 = vsel %vm551_vm2, %v1374_v33, -inf }
 0x5ac   : > { %1379 = vmax.xlane.f32.xlu0 %v1378_v35 }
 0x5ae   : > { %v1560_v39 = vpop.f32.mrb[12].mxu1 }
 0x5af   : > { %v1564_v41 = vmul.f32 2.0, %v1560_v39  ;;  %v2322_v42 = vpop.f32.mrb[13].mxu1 }
 0x5b1   : > { %v1565_v43 = vsub.f32 %v1489_v40, %v1564_v41 }
 0x5b3   : > { %v1566_v46 = vmax.f32 %v1565_v43, 0.0 }
 0x5b5   : > { %v1575_v38 = vmul.f32 -0.5, %v1566_v46 }
 0x5b7   : > { %v1576_v47 = vmul.f32 %v1575_v38, %v1571_v36 }
 0x5b9   : > { %v1577_v48 = vmul.f32 1.442695, %v1576_v47 }
 0x5bb   : > { %2509 = vpow2.f32 %v1577_v48 }
 0x5c5   : > { %v2510_v51 = vpop.eup %2509 }
 0x5c6   : > { %2324 = vmatpush3.xpose.msk.msra.mxu0 %vm738_vm3, %v2510_v51 }
 0x5c9   : > { %2326 = vmatmul.mubr.msk.f32.vlgmr.msra.gmra.mrb[10].mxu0 %vm738_vm3, %v1583_v44 }
 0x5e5   : > { %v1104_v52 = vpop.xlane.xlu1 %1103 }
 0x5e6   : > { %2511 = vrcp.f32 %v1104_v52 }
 0x5f0   : > { %v2512_v53 = vpop.eup %2511 }
 0x5f1   : > { %v1106_v54 = vmul.f32 %v2512_v53, %v2506_v25 }
 0x5f3   : > { %1108 = vst.msk [vmem:[#allocation11 + $0x8] sm:$0xff] %vm551_vm2, %v1106_v54 }
 0x639   : > { %v1380_v55 = vpop.xlane.xlu0 %1379 }
 0x63a   : > { %v1381_v56 = vsub.f32 %v1374_v33, %v1380_v55 }
 0x63c   : > { %v1382_v31 = vmul.f32 1.442695, %v1381_v56 }
 0x63e   : > { %2513 = vpow2.f32 %v1382_v31 }
 0x648   : > { %v2514_v57 = vpop.eup %2513 }
 0x649   : > { %v1384_v59 = vsel %vm551_vm2, %v2514_v57, 0.0 }
 0x64a   : > { %1385 = vadd.xlane.f32.xlu1 %v1384_v59 }
 0x69c   : > { %v1656_v58 = vpop.f32.mrb[10].mxu0 }
 0x69d   : > { %v2327_v60 = vpop.f32.mrb[11].mxu0  ;;  %v1660_v61 = vsel %vm551_vm2, %v1656_v58, -inf }
 0x69e   : > { %1661 = vmax.xlane.f32.xlu0 %v1660_v61 }
 0x6d7   : > { %v1386_v62 = vpop.xlane.xlu1 %1385 }
 0x6d8   : > { %2515 = vrcp.f32 %v1386_v62 }
 0x6e2   : > { %v2516_v63 = vpop.eup %2515 }
 0x6e3   : > { %v1388_v0 = vmul.f32 %v2516_v63, %v2514_v57 }
 0x6e5   : > { %1390 = vst.msk [vmem:[#allocation11 + $0x10] sm:$0xff] %vm551_vm2, %v1388_v0 }
 0x72b   : > { %v1662_v1 = vpop.xlane.xlu0 %1661 }
 0x72c   : > { %v1663_v2 = vsub.f32 %v1656_v58, %v1662_v1 }
 0x72e   : > { %v1664_v4 = vmul.f32 1.442695, %v1663_v2 }
 0x730   : > { %2517 = vpow2.f32 %v1664_v4 }
 0x73a   : > { %v2518_v5 = vpop.eup %2517 }
 0x73b   : > { %v1666_v8 = vsel %vm551_vm2, %v2518_v5, 0.0 }
 0x73c   : > { %1667 = vadd.xlane.f32.xlu1 %v1666_v8 }
 0x7c9   : > { %v1668_v9 = vpop.xlane.xlu1 %1667 }
 0x7ca   : > { %2519 = vrcp.f32 %v1668_v9 }
 0x7d4   : > { %v2520_v10 = vpop.eup %2519 }
 0x7d5   : > { %v1670_v11 = vmul.f32 %v2520_v10, %v2518_v5 }
 0x7d7   : > { %1672 = vst.msk [vmem:[#allocation11 + $0x18] sm:$0xff] %vm551_vm2, %v1670_v11 }
 0x7d8 PF: > { %v1675_v12 = vld [vmem:[#allocation8] sm:$0xff]  ;;  %v1676_v13 = vld [vmem:[#allocation8 + $0x8] sm:$0xff]  ;;  %v1677_v14 = vld [vmem:[#allocation8 + $0x10] sm:$0xff]  ;;  %v2790_v15 = vmov 0.0   ;;  %vm2791_vm4 = vmmov 0   ;;  %vm1688_vm5 = vcmask 261120  }
 0x7d9   : > { %2328 = vmatprep.subr.bf16.mxu0 %v2790_v15  ;;  %v1679_v16 = vpack.c.bf16 %v1676_v13, %v1675_v12  ;;  %v1678_v17 = vld [vmem:[#allocation8 + $0x18] sm:$0xff]  ;;  %2332 = vmatprep.mubr.msk.bf16.mxu0 %vm2791_vm4, %v2790_v15  ;;  %s3415_s16 = sld [smem:[#allocation22_spill]]  ;;  %vm1739_vm6 = vcmask 1043456   ;;  %v1733_v25 = vld [vmem:[#allocation11] sm:$0xff]  ;;  %s2793_s7 = smov 120   ;;  %vm1735_vm7 = vcmask 64512  }
 0x7da   : > { %2336 = vmatprep.subr.bf16.mxu1 %v2790_v15  ;;  %2338 = vmatprep.mubr.msk.bf16.mxu1 %vm2791_vm4, %v2790_v15  ;;  %v1680_v3 = vpack.c.bf16 %v1678_v17, %v1677_v14  ;;  %v1673_v18 = vld [vmem:[%s406_s26] sm:$0xff]  ;;  %s2792_s26 = smov 104   ;;  %v1734_v27 = vpack.c.bf16 %v1733_v25, %v1733_v25  ;;  %s2794_s13 = smov 112   ;;  %v1784_v28 = vld [vmem:[#allocation11 + $0x8] sm:$0xff]  ;;  %v1955_v29 = vld [vmem:[#allocation10] sm:$0xff]  ;;  %vm1950_vm8 = vcmask 130048  }
 0x7db   : > { %2329 = vmatpush3.bf16.msra.mxu0 %v1679_v16  ;;  %v1674_v19 = vpack.c.bf16 %v1673_v18, %v1673_v18  ;;  %v1785_v33 = vpack.c.bf16 %v1784_v28, %v1784_v28  ;;  %v1836_v35 = vld [vmem:[#allocation11 + $0x10] sm:$0xff]  ;;  %v1956_v47 = vld [vmem:[#allocation10 + $0x8] sm:$0xff]  ;;  %v1958_v50 = vld [vmem:[#allocation10 + $0x18] sm:$0xff]  ;;  %s2795_s22 = smov 8   ;;  %s2796_s12 = smov 16   ;;  %vm1952_vm9 = vcmask 195584  }
 0x7dc   : > { %2330 = vmatprep.subr.bf16.mxu0 %v2790_v15  ;;  %v1837_v40 = vpack.c.bf16 %v1836_v35, %v1836_v35  ;;  %v1959_v48 = vpack.c.bf16 %v1956_v47, %v1955_v29  ;;  %v1957_v49 = vld [vmem:[#allocation10 + $0x10] sm:$0xff]  ;;  %s2797_s28 = smov 24   ;;  %s2798_s30 = smov [#allocation11]  }
 0x7dd   : > { %v1960_v51 = vpack.c.bf16 %v1958_v50, %v1957_v49  ;;  %s2023_s14 = sshll.u32 %s2798_s30, 4  ;;  %p3416_p12 = scmp.eq.s32.totalorder %s2882_s23, 1  ;;  %s2024_s14 = int_to_ptr.vmem [resolvable:$true] %s2023_s14 }
 0x7de   : > { %v1887_v41 = vld [vmem:[#allocation11 + $0x18] sm:$0xff]  ;;  %s2663_s29 = scalar_lea.vmem %s2024_s14, 512  ;;  %p2670_p0 = scmp.lt.s32.totalorder %s2024_s14, %s2024_s14 }
 0x7df   : > { %2331 = vmatpush3.bf16.msra.mxu0 %v1680_v3  ;;  %v2200_v20 = vld [vmem:[%s3415_s16] ss:$0 sm:$0xff]  ;;  %v1888_v42 = vpack.c.bf16 %v1887_v41, %v1887_v41  ;;  %p2664_p9 = scmp.ne.s32.totalorder %s2024_s14, %s2663_s29  ;;  %p2671_p8 = scmp.lt.s32.totalorder %s2663_s29, %s2663_s29 }
 0x7e0   : > { %2348 = vmatprep.subr.bf16.mxu0 %v2790_v15 }
 0x7e1   : > { %p2665_p5 = pnand %p2664_p9, %p3416_p12  ;;  %p2672_p10 = por %p2671_p8, %p2670_p0 }
 0x7e2   : > { %2333 = vmatmul.mubr.msk.bf16.vlgmr.msra.gmra.mrb[0].mxu0 %vm1688_vm5, %v1674_v19 }
 0x7e3   : > { %2350 = vmatprep.mubr.msk.bf16.mxu0 %vm2791_vm4, %v2790_v15  ;;  %p2666_p13 = pneg %p2665_p5 }
 0x7e5   : > { %p2673_p2 = pnand %p2672_p10, %p2666_p13 }
 0x8b5   : > { %v1726_v21 = vpop.f32.mrb[0].mxu0 }
 0x8b6   : > { %v1727_v22 = vadd.f32 %v2200_v20, %v1726_v21  ;;  %v2334_v23 = vpop.f32.mrb[1].mxu0 }
 0x8b7   : > { %v1729_v24 = vpop.f32.mrb[2].mxu0 }
 0x8b8   : > { %v1732_v26 = vpack.c.bf16 %v1727_v22, %v1727_v22  ;;  %v2335_v6 = vpop.f32.mrb[3].mxu0 }
 0x8ba   : > { %1889 = vrot.lane.b32.xlu1 %v1732_v26, %s2792_s26  ;;  %1787 = vrot.lane.b32.xlu0 %v1732_v26, %s2793_s7  ;;  %v1741_v7 = vsel %vm1739_vm6, %v1732_v26, 0 }
 0x8bb   : > { %2337 = vmatpush3.bf16.msra.mxu1 %v1741_v7 }
 0x8bc   : > { %2342 = vmatprep.subr.bf16.mxu1 %v2790_v15 }
 0x8be   : > { %1838 = vrot.lane.b32.xlu0 %v1732_v26, %s2794_s13  ;;  %2339 = vmatmul.mubr.msk.bf16.vlgmr.msra.gmra.mrb[0].mxu1 %vm1735_vm7, %v1734_v27 }
 0x8bf   : > { %2344 = vmatprep.mubr.msk.bf16.mxu1 %vm2791_vm4, %v2790_v15 }
 0x92c   : > { %v1788_v30 = vpop.permute.xlu0 %1787  ;;  %v1890_v34 = vpop.permute.xlu1 %1889 }
 0x92d   : > { %v1793_v32 = vsel %vm1739_vm6, %v1788_v30, 0  ;;  %v1895_v37 = vsel %vm1739_vm6, %v1890_v34, 0 }
 0x92e   : > { %2343 = vmatpush3.bf16.msra.mxu1 %v1793_v32 }
 0x92f   : > { %2354 = vmatprep.subr.bf16.mxu1 %v2790_v15 }
 0x930   : > { %v1839_v36 = vpop.permute.xlu0 %1838 }
 0x931   : > { %v1844_v39 = vsel %vm1739_vm6, %v1839_v36, 0  ;;  %2345 = vmatmul.mubr.msk.bf16.vlgmr.msra.gmra.mrb[4].mxu1 %vm1735_vm7, %v1785_v33 }
 0x932   : > { %2349 = vmatpush3.bf16.msra.mxu0 %v1844_v39  ;;  %2355 = vmatpush3.bf16.msra.mxu1 %v1895_v37 }
 0x933   : > { %2356 = vmatprep.mubr.msk.bf16.mxu1 %vm2791_vm4, %v2790_v15  ;;  %2360 = vmatprep.subr.bf16.mxu0 %v2790_v15 }
 0x935   : > { %2351 = vmatmul.mubr.msk.bf16.vlgmr.msra.gmra.mrb[4].mxu0 %vm1735_vm7, %v1837_v40 }
 0x936   : > { %2364 = vmatprep.mubr.msk.bf16.mxu0 %vm2791_vm4, %v2790_v15  ;;  %2361 = vmatpush3.bf16.msra.mxu0 %v1959_v48 }
 0x937   : > { %2362 = vmatprep.subr.bf16.mxu0 %v2790_v15 }
 0x939   : > { %2357 = vmatmul.mubr.msk.bf16.vlgmr.msra.gmra.mrb[8].mxu1 %vm1735_vm7, %v1888_v42 }
 0x93a   : > { %2363 = vmatpush3.bf16.msra.mxu0 %v1960_v51 }
 0x991   : > { %v1777_v43 = vpop.f32.mrb[0].mxu1 }
 0x992   : > { %v2340_v45 = vpop.f32.mrb[1].mxu1 }
 0x993   : > { %v1780_v46 = vpop.f32.mrb[2].mxu1 }
 0x994   : > { %v2341_v38 = vpop.f32.mrb[3].mxu1 }
 0xa04   : > { %v1829_v44 = vpop.f32.mrb[4].mxu1 }
 0xa05   : > { %1938 = vrot.lane.b32.xlu1 %v1829_v44, %s2795_s22  ;;  %v2346_v52 = vpop.f32.mrb[5].mxu1 }
 0xa06   : > { %v1832_v53 = vpop.f32.mrb[6].mxu1 }
 0xa07   : > { %v2347_v54 = vpop.f32.mrb[7].mxu1 }
 0xa08   : > { %v1880_v55 = vpop.f32.mrb[4].mxu0 }
 0xa09   : > { %1942 = vrot.lane.b32.xlu0 %v1880_v55, %s2796_s12  ;;  %v2352_v56 = vpop.f32.mrb[5].mxu0 }
 0xa0a   : > { %v1883_v31 = vpop.f32.mrb[6].mxu0 }
 0xa0b   : > { %v2353_v57 = vpop.f32.mrb[7].mxu0 }
 0xa0c   : > { %v1931_v59 = vpop.f32.mrb[8].mxu1 }
 0xa0d   : > { %1946 = vrot.lane.b32.xlu1 %v1931_v59, %s2797_s28  ;;  %v2358_v58 = vpop.f32.mrb[9].mxu1 }
 0xa0e   : > { %v1934_v60 = vpop.f32.mrb[10].mxu1 }
 0xa0f   : > { %v2359_v61 = vpop.f32.mrb[11].mxu1 }
 0xa77   : > { %v1939_v62 = vpop.permute.xlu1 %1938 }
 0xa78   : > { %v1949_v0 = vsel %vm1735_vm7, %v1777_v43, %v1939_v62 }
 0xa7b   : > { %v1943_v63 = vpop.permute.xlu0 %1942 }
 0xa7c   : > { %v1951_v1 = vsel %vm1950_vm8, %v1949_v0, %v1943_v63 }
 0xa7f   : > { %v1947_v2 = vpop.permute.xlu1 %1946 }
 0xa80   : > { %v1953_v4 = vsel %vm1952_vm9, %v1951_v1, %v1947_v2 }
 0xa81   : > { %v1954_v5 = vpack.c.bf16 %v1953_v4, %v1953_v4 }
 0xa83   : > { %2365 = vmatmul.mubr.msk.bf16.vlgmr.msra.gmra.mrb[8].mxu0 %vm1688_vm5, %v1954_v5 }
 0xa84   : > { %2676 = shalt.err (!%p2673_p2)
}
 0xa85   : > { %s3417_s26 = sld [smem:[#allocation24_spill]]  ;;  %p3418_p3 = pmov %p3416_p12 }
 0xa8b   : > { %s2677_s7 = scalar_lea.hbm %s3417_s26, 512 }
 0xa8c   : > { %p2678_p7 = scmp.ne.s32.totalorder %s3417_s26, %s2677_s7  ;;  %p2683_p11 = scmp.lt.u32.totalorder %s2677_s7, %s3417_s26 }
 0xa8e   : > { %p2679_p4 = pnand %p2678_p7, %p3418_p3 }
 0xa90   : > { %p2680_p6 = pneg %p2679_p4 }
 0xa92   : > { %p2685_p1 = pnand %p2683_p11, %p2680_p6 }
 0xa94   : > { %2688 = shalt.err (!%p2685_p1)
}
 0xa95   : > { %s2799_s29 = smov 128   ;;  %p3419_p9 = pmov %p3418_p3 }
 0xa96   : > { %s3420_s21 = sld [smem:[#allocation23_spill]]  ;;  %s2210_s7 = sshll.u32 %s2882_s23, 7 }
 0xa97   : > { %2393 = dma.vmem_to_hbm [thread:$0]  (%p3419_p9), %s2024_s14, 512, %s3417_s26, [#allocation4], %s2799_s29, %s2799_s29, %s2795_s22  }
 0xa98   : > { %s2039_s28 = sshll.u32 %s456_s24, 4  ;;  %s3421_s1 = sld [smem:[#allocation25_spill]]  ;;  %s3322_s28 = int_to_ptr.vmem [resolvable:$true] %s2039_s28 }
 0xa99   : > { %s2689_s14 = scalar_lea.vmem %s3322_s28, 128  ;;  %p3423_p5 = scmp.ne.s32.totalorder %s3401_s9, 0 }
 0xa9a   : > { %p2690_p12 = scmp.ne.s32.totalorder %s3322_s28, %s2689_s14  ;;  %s2800_s0 = smov [#allocation12]  }
 0xa9b   : > { %s2693_s29 = sshll.u32 %s2800_s0, 4  ;;  %s2694_s29 = int_to_ptr.vmem [resolvable:$false] %s2693_s29 }
 0xa9c   : > { %v2206_v8 = vld [vmem:[%s3420_s21] ss:$0 sm:$0xff]  ;;  %s3422_s21 = sand.u32 1, %s2763_s18   ;;  %p2691_p13 = pnand %p2690_p12, %p3423_p5 }
 0xa9d   : > { %s2013_s22 = scalar_lea.sflag [#allocation13], %s3422_s21  ;;  %s2695_s16 = scalar_lea.vmem %s2694_s29, 256 }
 0xa9e   : > { %s3320_s15 = scalar_lea.hbm %s3421_s1, %s2210_s7  ;;  %p2692_p0 = pneg %p2691_p13 }
 0xa9f   : > { %p2696_p8 = scmp.lt.s32.totalorder %s3322_s28, %s2694_s29  ;;  %p2697_p10 = scmp.lt.s32.totalorder %s2695_s16, %s2689_s14 }
 0xaa1   : > { %p2698_p2 = por %p2697_p10, %p2696_p8 }
 0xaa3   : > { %p2699_p7 = pnand %p2698_p2, %p2692_p0 }
 0xb56   : > { %v2005_v9 = vpop.f32.mrb[8].mxu0 }
 0xb57   : > { %v2006_v10 = vadd.f32 %v2206_v8, %v2005_v9  ;;  %v2366_v11 = vpop.f32.mrb[9].mxu0 }
 0xb58   : > { %v2008_v12 = vpop.f32.mrb[10].mxu0 }
 0xb59   : > { %2011 = vst.msk [vmem:[%s456_s24] sm:$0xff] %vm1688_vm5, %v2006_v10  ;;  %v2367_v13 = vpop.f32.mrb[11].mxu0 }
 0xb5a   : > { %2702 = shalt.err (!%p2699_p7)
}
 0xb5b   : > { %s2703_s27 = scalar_lea.hbm %s3320_s15, 128  ;;  %s2707_s12 = scalar_lea.hbm %s3421_s1, 256 }
 0xb5c   : > { %p2704_p3 = scmp.ne.s32.totalorder %s3320_s15, %s2703_s27  ;;  %p2708_p11 = scmp.lt.u32.totalorder %s3320_s15, %s3421_s1 }
 0xb5d   : > { %p2709_p1 = scmp.lt.u32.totalorder %s2707_s12, %s2703_s27  ;;  %p2711_p12 = scmp.lt.u32.totalorder %s2703_s27, %s3320_s15 }
 0xb5e   : > { %p2705_p4 = pnand %p2704_p3, %p3423_p5 }
 0xb5f   : > { %p2710_p9 = por %p2709_p1, %p2708_p11 }
 0xb60   : > { %p2706_p6 = pneg %p2705_p4 }
 0xb61   : > { %p2712_p13 = por %p2711_p12, %p2710_p9 }
 0xb63   : > { %p2713_p0 = pnand %p2712_p13, %p2706_p6 }
 0xb65   : > { %2716 = shalt.err (!%p2713_p0)
}
 0xb66   : > { %2394 = dma.vmem_to_hbm [thread:$0]  (%p3423_p5), %s3322_s28, 128, %s3320_s15, %s2013_s22  }
 0xb67   : > { %p3424_p8 = scmp.eq.s32.totalorder %s2882_s23, 1 }
 0xb69   : > { %2750 = dma.done.wait (%p3424_p8), [#allocation4], 512   ;;  %p3425_p10 = pmov %p3424_p8 }
 0xb6b   : > { %2752 = vsyncadd (%p3425_p10), [#allocation4], 4294966784 }
 0xb6c PF: > { %s2055_s21 = sand.u32 1, %s2759_s17   ;;  %p3426_p2 = scmp.ne.s32.totalorder %s3404_s11, 0 }
 0xb6d   : > { %p3427_p7 = scmp.ge.s32.totalorder %s2771_s20, 2  ;;  %s2056_s14 = scalar_lea.sflag [#allocation13], %s2055_s21 }
 0xb6f   : > { %p2416_p3 = pnand %p3427_p7, %p3426_p2 }
 0xb71   : > { %2754 = dma.done.wait (!%p2416_p3), %s2056_s14, 128  }
 0xb72   : > { %2756 = vsyncadd (!%p2416_p3), %s2056_s14, 4294967168  ;;  %p28_p5 = scmp.ge.s32.totalorder %s3015_s25, 4   ;;  %s3428_s17 = smov %s2763_s18 }
 0xb73   : > { %s3429_s18 = smov %s2767_s19  ;;  %s3430_s19 = smov %s3032_s10 }
 0xb74   : > { %s3431_s20 = smov %s3015_s25  ;;  %30 = sbr.rel (!%p28_p5) target bundleno = 15 (0xf), region = 147 }
 0xb7b   :  { %2061 = vsyncpa [#allocation3], 1 }
 0xb7c   :  { %2063 = vsyncpa [#allocation3 + $0x1], 1 }
 0xb7d   :  { %2064 = vsyncpa [#allocation6], 1 }
 0xb7e   :  { %2066 = vsyncpa [#allocation6 + $0x1], 1 }
 0xb7f   :  { %2067 = vsyncpa [#allocation9], 1 }
 0xb80   :  { %2068 = vsyncpa [#allocation4], 1 }
 0xb81   :  { %2070 = vsyncpa [#allocation4 + $0x1], 1 }
 0xb82   :  { %2071 = vsyncpa [#allocation13], 1 }
 0xb83   :  { %2073 = vsyncpa [#allocation13 + $0x1], 1 }

</bundles_post_ra>
